<compile_context>
chip_gen: v7x
topology: tpu7x:2x2x1
jax: 0.10.0
libtpu: 0.0.40
codegen_flags: <defaults>
</compile_context>

<pallas_src>
import jax
import jax.numpy as jnp
import numpy as np
from jax.experimental import pallas as pl
from jax.experimental.pallas import tpu as pltpu

IN_FEATURES = 28 * 28   # 784
HIDDEN = 512
OUT_FEATURES = 10
OUT_PAD = 128           # lane-dense output width (sliced back to 10 in wrapper)


def mlp_kernel(x_ref, w1_ref, b1_ref, w2_ref, b2_ref, w3_ref, b3_ref, out_ref):
    # x_ref : (TM, 784) f32        w1_ref: (784, 512) bf16   b1_ref: (1, 512) f32
    # w2_ref: (512, 512) bf16      b2_ref: (1, 512)  f32
    # w3_ref: (512, 128) bf16      b3_ref: (1, 128)  f32
    # out_ref: (TM, 128) bf16
    x = x_ref[...].astype(jnp.bfloat16)            # f32 -> bf16 cast on VPU, in-kernel
    h1 = jnp.dot(x, w1_ref[...], preferred_element_type=jnp.float32) + b1_ref[...]
    h1 = jnp.maximum(h1, 0.0)                      # bias+ReLU in f32 (v5e VPU has no bf16)
    h2 = jnp.dot(h1.astype(jnp.bfloat16), w2_ref[...],
                 preferred_element_type=jnp.float32) + b2_ref[...]
    h2 = jnp.maximum(h2, 0.0)
    logits = jnp.dot(h2.astype(jnp.bfloat16), w3_ref[...],
                     preferred_element_type=jnp.float32) + b3_ref[...]
    out_ref[...] = logits.astype(out_ref.dtype)    # bf16 store (half the writeback bytes)


def prepare_params(params):
    """One-time weight prep: transpose PyTorch (out,in)->(in,out), pad N, cast bf16."""
    w1 = params["w1"].T.astype(jnp.bfloat16)                        # (784, 512)
    w2 = params["w2"].T.astype(jnp.bfloat16)                        # (512, 512)
    w3 = jnp.pad(params["w3"].T.astype(jnp.bfloat16),
                 ((0, 0), (0, OUT_PAD - OUT_FEATURES)))             # (512, 128)
    b1 = params["b1"].astype(jnp.float32).reshape(1, HIDDEN)
    b2 = params["b2"].astype(jnp.float32).reshape(1, HIDDEN)
    b3 = jnp.pad(params["b3"].astype(jnp.float32),
                 (0, OUT_PAD - OUT_FEATURES)).reshape(1, OUT_PAD)
    return tuple(jax.device_put(a) for a in (w1, b1, w2, b2, w3, b3))


def _pick_tm(n):
    """Batch-tile size (static, derived from shape).

    Large batches: big tiles to amortize the ~0.35us per-grid-step cost on
    single-TC v5e/v6e.  Small serving batches: split into two tiles so the
    'parallel' batch axis can land on both of v7x's TensorCores.
    """
    if n >= 2048:
        return 512
    if n >= 512:
        return 256
    if n >= 16:
        half = -(-n // 2)
        return ((half + 7) // 8) * 8    # sublane-aligned (multiple of 8)
    return 8


@jax.jit
def neural_network_forward(x_nchw, prepared):
    """x_nchw: (N, 1, 28, 28) f32.  prepared: output of prepare_params()."""
    w1, b1, w2, b2, w3, b3 = prepared
    n = x_nchw.shape[0]

    # nn.Flatten(): stays f32 — the kernel reads it once and casts in-kernel.
    x = x_nchw.reshape(n, IN_FEATURES)

    tm = _pick_tm(n)
    grid = pl.cdiv(n, tm)   # partial last block: OOB rows are garbage, rows are
                            # independent, and their outputs are discarded.

    # Resident operands: constant index_map + single buffer (no need to
    # double-buffer blocks whose index never changes).
    resident = lambda shape: pl.BlockSpec(shape, lambda i: (0, 0),
                                          pipeline_mode=pl.Buffered(1))

    out = pl.pallas_call(
        mlp_kernel,
        out_shape=jax.ShapeDtypeStruct((n, OUT_PAD), jnp.bfloat16),
        grid=(grid,),
        in_specs=[
            pl.BlockSpec((tm, IN_FEATURES), lambda i: (i, 0)),  # x tile, pipelined
            resident((IN_FEATURES, HIDDEN)), resident((1, HIDDEN)),   # w1, b1
            resident((HIDDEN, HIDDEN)),      resident((1, HIDDEN)),   # w2, b2
            resident((HIDDEN, OUT_PAD)),     resident((1, OUT_PAD)),  # w3, b3
        ],
        out_specs=pl.BlockSpec((tm, OUT_PAD), lambda i: (i, 0)),
        compiler_params=pltpu.CompilerParams(
            dimension_semantics=("parallel",),  # shard batch tiles across TCs (v7x)
            vmem_limit_bytes=32 << 20,          # per-core budget; ~5 MiB actually used
        ),
    )(x, w1, b1, w2, b2, w3, b3)

    return out[:, :OUT_FEATURES].astype(jnp.float32)


def init_params(key):
    """Deterministic init matching nn.Linear default (Kaiming-uniform-ish)."""
    keys = jax.random.split(key, 6)

    def linear(kw, kb, fan_in, fan_out):
        bound = 1.0 / np.sqrt(fan_in)
        w = jax.random.uniform(kw, (fan_out, fan_in), jnp.float32, -bound, bound)
        b = jax.random.uniform(kb, (fan_out,), jnp.float32, -bound, bound)
        return w, b

    w1, b1 = linear(keys[0], keys[1], IN_FEATURES, HIDDEN)
    w2, b2 = linear(keys[2], keys[3], HIDDEN, HIDDEN)
    w3, b3 = linear(keys[4], keys[5], HIDDEN, OUT_FEATURES)
    return {"w1": w1, "b1": b1, "w2": w2, "b2": b2, "w3": w3, "b3": b3}


def reference_forward(x_nchw, params):
    """Pure-JAX reference with the same bf16-input / f32-accumulate recipe."""
    x = x_nchw.reshape(x_nchw.shape[0], -1).astype(jnp.bfloat16)
    w1 = params["w1"].T.astype(jnp.bfloat16)
    w2 = params["w2"].T.astype(jnp.bfloat16)
    w3 = params["w3"].T.astype(jnp.bfloat16)
    h1 = jnp.maximum(
        jnp.dot(x, w1, preferred_element_type=jnp.float32) + params["b1"], 0.0)
    h2 = jnp.maximum(
        jnp.dot(h1.astype(jnp.bfloat16), w2, preferred_element_type=jnp.float32)
        + params["b2"], 0.0)
    logits = (jnp.dot(h2.astype(jnp.bfloat16), w3, preferred_element_type=jnp.float32)
              + params["b3"])
    # Match the kernel's bf16 output quantization before comparing.
    return logits.astype(jnp.bfloat16).astype(jnp.float32)


if __name__ == "__main__":
    key = jax.random.PRNGKey(0)
    k_param, k_x = jax.random.split(key)
    params = init_params(k_param)
    prepared = prepare_params(params)   # one-time weight transpose/pad/cast

    # Small MNIST-shaped batch, NCHW like PyTorch: (N=2, C=1, H=28, W=28).
    x = jax.random.normal(k_x, (2, 1, 28, 28), jnp.float32)

    logits = neural_network_forward(x, prepared)
    logits = jax.block_until_ready(logits)
    assert logits.shape == (2, OUT_FEATURES)

    ref = reference_forward(x, params)
    np.testing.assert_allclose(np.asarray(logits), np.asarray(ref),
                               rtol=2e-2, atol=2e-2)

    print("KERNEL_OK")
</pallas_src>

<mosaic_0001>
module attributes {stable_mosaic.version = 11 : i64} {
  func.func @mlp_kernel(%arg0: i32, %arg1: memref<8x784xf32, #tpu.memory_space<vmem>>, %arg2: memref<784x512xbf16, #tpu.memory_space<vmem>>, %arg3: memref<1x512xf32, #tpu.memory_space<vmem>>, %arg4: memref<512x512xbf16, #tpu.memory_space<vmem>>, %arg5: memref<1x512xf32, #tpu.memory_space<vmem>>, %arg6: memref<512x128xbf16, #tpu.memory_space<vmem>>, %arg7: memref<1x128xf32, #tpu.memory_space<vmem>>, %arg8: memref<8x128xbf16, #tpu.memory_space<vmem>>) attributes {dimension_semantics = [#tpu.dimension_semantics<parallel>], iteration_bounds = array<i64: 1>, scalar_prefetch = 0 : i64, scratch_operands = 0 : i64, tpu.core_type = #tpu.core_type<tc>, window_params = [{transform_indices = @transform_0, window_bounds = array<i64: 8, 784>}, {pipeline_mode = #tpu.pipeline_mode<synchronous>, transform_indices = @transform_1, window_bounds = array<i64: 784, 512>}, {pipeline_mode = #tpu.pipeline_mode<synchronous>, transform_indices = @transform_2, window_bounds = array<i64: 1, 512>}, {pipeline_mode = #tpu.pipeline_mode<synchronous>, transform_indices = @transform_3, window_bounds = array<i64: 512, 512>}, {pipeline_mode = #tpu.pipeline_mode<synchronous>, transform_indices = @transform_4, window_bounds = array<i64: 1, 512>}, {pipeline_mode = #tpu.pipeline_mode<synchronous>, transform_indices = @transform_5, window_bounds = array<i64: 512, 128>}, {pipeline_mode = #tpu.pipeline_mode<synchronous>, transform_indices = @transform_6, window_bounds = array<i64: 1, 128>}, {transform_indices = @transform_7, window_bounds = array<i64: 8, 128>}]} {
    %c0 = arith.constant 0 : index
    %c0_0 = arith.constant 0 : index
    %0 = vector.load %arg1[%c0, %c0_0] : memref<8x784xf32, #tpu.memory_space<vmem>>, vector<8x784xf32>
    %1 = arith.truncf %0 : vector<8x784xf32> to vector<8x784xbf16>
    %c0_1 = arith.constant 0 : index
    %c0_2 = arith.constant 0 : index
    %2 = vector.load %arg2[%c0_1, %c0_2] : memref<784x512xbf16, #tpu.memory_space<vmem>>, vector<784x512xbf16>
    %cst = arith.constant dense<0.000000e+00> : vector<8x512xf32>
    %3 = tpu.matmul %1, %2, %cst {dimension_numbers = #tpu.dot_dimension_numbers<[1], [0], [0], [1], [0, 0, 1, 1], [], []>} : vector<8x784xbf16>, vector<784x512xbf16>, vector<8x512xf32> -> vector<8x512xf32>
    %c0_3 = arith.constant 0 : index
    %c0_4 = arith.constant 0 : index
    %4 = vector.load %arg3[%c0_3, %c0_4] : memref<1x512xf32, #tpu.memory_space<vmem>>, vector<1x512xf32>
    %5 = vector.broadcast %4 : vector<1x512xf32> to vector<8x512xf32>
    %6 = arith.addf %3, %5 : vector<8x512xf32>
    %cst_5 = arith.constant 0.000000e+00 : f32
    %7 = vector.broadcast %cst_5 : f32 to vector<8x512xf32>
    %8 = arith.maximumf %6, %7 : vector<8x512xf32>
    %9 = arith.truncf %8 : vector<8x512xf32> to vector<8x512xbf16>
    %c0_6 = arith.constant 0 : index
    %c0_7 = arith.constant 0 : index
    %10 = vector.load %arg4[%c0_6, %c0_7] : memref<512x512xbf16, #tpu.memory_space<vmem>>, vector<512x512xbf16>
    %cst_8 = arith.constant dense<0.000000e+00> : vector<8x512xf32>
    %11 = tpu.matmul %9, %10, %cst_8 {dimension_numbers = #tpu.dot_dimension_numbers<[1], [0], [0], [1], [0, 0, 1, 1], [], []>} : vector<8x512xbf16>, vector<512x512xbf16>, vector<8x512xf32> -> vector<8x512xf32>
    %c0_9 = arith.constant 0 : index
    %c0_10 = arith.constant 0 : index
    %12 = vector.load %arg5[%c0_9, %c0_10] : memref<1x512xf32, #tpu.memory_space<vmem>>, vector<1x512xf32>
    %13 = vector.broadcast %12 : vector<1x512xf32> to vector<8x512xf32>
    %14 = arith.addf %11, %13 : vector<8x512xf32>
    %cst_11 = arith.constant 0.000000e+00 : f32
    %15 = vector.broadcast %cst_11 : f32 to vector<8x512xf32>
    %16 = arith.maximumf %14, %15 : vector<8x512xf32>
    %17 = arith.truncf %16 : vector<8x512xf32> to vector<8x512xbf16>
    %c0_12 = arith.constant 0 : index
    %c0_13 = arith.constant 0 : index
    %18 = vector.load %arg6[%c0_12, %c0_13] : memref<512x128xbf16, #tpu.memory_space<vmem>>, vector<512x128xbf16>
    %cst_14 = arith.constant dense<0.000000e+00> : vector<8x128xf32>
    %19 = tpu.matmul %17, %18, %cst_14 {dimension_numbers = #tpu.dot_dimension_numbers<[1], [0], [0], [1], [0, 0, 1, 1], [], []>} : vector<8x512xbf16>, vector<512x128xbf16>, vector<8x128xf32> -> vector<8x128xf32>
    %c0_15 = arith.constant 0 : index
    %c0_16 = arith.constant 0 : index
    %20 = vector.load %arg7[%c0_15, %c0_16] : memref<1x128xf32, #tpu.memory_space<vmem>>, vector<1x128xf32>
    %21 = vector.broadcast %20 : vector<1x128xf32> to vector<8x128xf32>
    %22 = arith.addf %19, %21 : vector<8x128xf32>
    %23 = arith.truncf %22 : vector<8x128xf32> to vector<8x128xbf16>
    %c0_17 = arith.constant 0 : index
    %c0_18 = arith.constant 0 : index
    %24 = vector.load %arg8[%c0_17, %c0_18] : memref<8x128xbf16, #tpu.memory_space<vmem>>, vector<8x128xbf16>
    tpu.vector_store %arg8[%c0_17, %c0_18], %23 {strides = array<i32>} : memref<8x128xbf16, #tpu.memory_space<vmem>>, vector<8x128xbf16>,
    return
  }
  func.func @transform_0(%arg0: i32) -> (i32, i32) {
    %c0_i32 = arith.constant 0 : i32
    %c0_i32_0 = arith.constant 0 : i32
    return %arg0, %c0_i32 : i32, i32
  }
  func.func @transform_1(%arg0: i32) -> (i32, i32) {
    %c0_i32 = arith.constant 0 : i32
    %c0_i32_0 = arith.constant 0 : i32
    %c0_i32_1 = arith.constant 0 : i32
    return %c0_i32, %c0_i32_0 : i32, i32
  }
  func.func @transform_2(%arg0: i32) -> (i32, i32) {
    %c0_i32 = arith.constant 0 : i32
    %c0_i32_0 = arith.constant 0 : i32
    %c0_i32_1 = arith.constant 0 : i32
    return %c0_i32, %c0_i32_0 : i32, i32
  }
  func.func @transform_3(%arg0: i32) -> (i32, i32) {
    %c0_i32 = arith.constant 0 : i32
    %c0_i32_0 = arith.constant 0 : i32
    %c0_i32_1 = arith.constant 0 : i32
    return %c0_i32, %c0_i32_0 : i32, i32
  }
  func.func @transform_4(%arg0: i32) -> (i32, i32) {
    %c0_i32 = arith.constant 0 : i32
    %c0_i32_0 = arith.constant 0 : i32
    %c0_i32_1 = arith.constant 0 : i32
    return %c0_i32, %c0_i32_0 : i32, i32
  }
  func.func @transform_5(%arg0: i32) -> (i32, i32) {
    %c0_i32 = arith.constant 0 : i32
    %c0_i32_0 = arith.constant 0 : i32
    %c0_i32_1 = arith.constant 0 : i32
    return %c0_i32, %c0_i32_0 : i32, i32
  }
  func.func @transform_6(%arg0: i32) -> (i32, i32) {
    %c0_i32 = arith.constant 0 : i32
    %c0_i32_0 = arith.constant 0 : i32
    %c0_i32_1 = arith.constant 0 : i32
    return %c0_i32, %c0_i32_0 : i32, i32
  }
  func.func @transform_7(%arg0: i32) -> (i32, i32) {
    %c0_i32 = arith.constant 0 : i32
    %c0_i32_0 = arith.constant 0 : i32
    return %arg0, %c0_i32 : i32, i32
  }
}

</mosaic_0001>

<bundles_post_ra>
// kernel: neural_network_forward.1
= control target key start
LH: loop header
LB: loop body
LE: loop exit
PB: predicated region body
PF: predicated region fallthrough
CT: control target
= control target key end

     0   :  { %12 = vsyncpa [#allocation3], 0  ;;  %s4330_s0 = inlined_call_operand.vmem [shape: f32[2,784], index: 0, kind: input, shape index: {}]   ;;  %s4331_s1 = inlined_call_operand.hbm [shape: bf16[784,512], index: 1, kind: input, shape index: {}]   ;;  %s4332_s2 = inlined_call_operand.vmem [shape: f32[1,512], index: 2, kind: input, shape index: {}]   ;;  %s4333_s3 = inlined_call_operand.hbm [shape: bf16[512,512], index: 3, kind: input, shape index: {}]   ;;  %s4334_s4 = inlined_call_operand.vmem [shape: f32[1,512], index: 4, kind: input, shape index: {}]   ;;  %s4335_s5 = inlined_call_operand.hbm [shape: bf16[512,128], index: 5, kind: input, shape index: {}]   ;;  %s4336_s6 = inlined_call_operand.vmem [shape: f32[1,128], index: 6, kind: input, shape index: {}]   ;;  %s4337_s7 = inlined_call_operand.vmem [shape: bf16[2,128], index: 7, kind: output, shape index: {}]  }
   0x1   :  { %13 = vsyncpa [#allocation5], 0  ;;  %s4142_s24 = smov [#allocation4]   ;;  %s4143_s26 = smov [#allocation2]  }
   0x2   :  { %s35_s25 = sshll.u32 %s4142_s24, 4  ;;  %s21_s27 = sshll.u32 %s4143_s26, 4  ;;  %s36_s25 = int_to_ptr.vmem [resolvable:$true] %s35_s25  ;;  %s4192_s27 = int_to_ptr.vmem [resolvable:$true] %s21_s27 }
   0x3   :  { %s4072_s30 = scalar_lea.hbm %s4333_s3, 16384 }
   0x4   :  { %p4073_p0 = scmp.ne.s32.totalorder %s4333_s3, %s4072_s30  ;;  %p4076_p1 = scmp.lt.u32.totalorder %s4072_s30, %s4333_s3 }
   0x6   :  { %p4078_p2 = pnand %p4076_p1, %p4073_p0 }
   0x8   :  { %4081 = shalt.err (!%p4078_p2)
}
   0x9   :  { %s4082_s12 = scalar_lea.vmem %s36_s25, 16384  ;;  %p4087_p4 = scmp.lt.s32.totalorder %s36_s25, %s36_s25 }
   0xa   :  { %p4083_p3 = scmp.ne.s32.totalorder %s36_s25, %s4082_s12  ;;  %p4088_p5 = scmp.lt.s32.totalorder %s4082_s12, %s4082_s12 }
   0xc   :  { %p4089_p6 = por %p4088_p5, %p4087_p4 }
   0xe   :  { %p4090_p7 = pnand %p4089_p6, %p4083_p3 }
  0x10   :  { %4093 = shalt.err (!%p4090_p7)
}
  0x11   :  { %s4144_s13 = smov 256   ;;  %s4145_s14 = smov 16  }
  0x12   :  { %41 = dma.hbm_to_vmem [thread:$0]  %s4333_s3, 16384, %s36_s25, [#allocation5], %s4144_s13, %s4144_s13, %s4145_s14  }
  0x13   :  { %s4094_s19 = scalar_lea.hbm %s4331_s1, 25088 }
  0x14   :  { %p4095_p8 = scmp.ne.s32.totalorder %s4331_s1, %s4094_s19  ;;  %p4098_p9 = scmp.lt.u32.totalorder %s4094_s19, %s4331_s1 }
  0x16   :  { %p4100_p10 = pnand %p4098_p9, %p4095_p8 }
  0x18   :  { %4103 = shalt.err (!%p4100_p10)
}
  0x19   :  { %s4104_s24 = scalar_lea.vmem %s4192_s27, 25088  ;;  %p4109_p12 = scmp.lt.s32.totalorder %s4192_s27, %s4192_s27 }
  0x1a   :  { %p4105_p11 = scmp.ne.s32.totalorder %s4192_s27, %s4104_s24  ;;  %p4110_p13 = scmp.lt.s32.totalorder %s4104_s24, %s4104_s24 }
  0x1c   :  { %p4111_p0 = por %p4110_p13, %p4109_p12 }
  0x1e   :  { %p4112_p1 = pnand %p4111_p0, %p4105_p11 }
  0x20   :  { %4115 = shalt.err (!%p4112_p1)
}
  0x21   :  { %27 = dma.hbm_to_vmem [thread:$0]  %s4331_s1, 25088, %s4192_s27, [#allocation3], %s4144_s13, %s4144_s13, %s4145_s14  }
  0x22   :  { %s4146_s26 = smov [#allocation6]   ;;  %s4116_s8 = scalar_lea.hbm %s4335_s5, 4096 }
  0x23   :  { %s49_s28 = sshll.u32 %s4146_s26, 4  ;;  %p4117_p2 = scmp.ne.s32.totalorder %s4335_s5, %s4116_s8  ;;  %s50_s28 = int_to_ptr.vmem [resolvable:$true] %s49_s28 }
  0x24   :  { %p4120_p3 = scmp.lt.u32.totalorder %s4116_s8, %s4335_s5 }
  0x26   :  { %p4122_p4 = pnand %p4120_p3, %p4117_p2 }
  0x28   :  { %4125 = shalt.err (!%p4122_p4)
}
  0x29   :  { %s4126_s15 = scalar_lea.vmem %s50_s28, 4096  ;;  %p4131_p6 = scmp.lt.s32.totalorder %s50_s28, %s50_s28 }
  0x2a   :  { %p4127_p5 = scmp.ne.s32.totalorder %s50_s28, %s4126_s15  ;;  %p4132_p7 = scmp.lt.s32.totalorder %s4126_s15, %s4126_s15 }
  0x2c   :  { %p4133_p8 = por %p4132_p7, %p4131_p6 }
  0x2e   :  { %p4134_p9 = pnand %p4133_p8, %p4127_p5 }
  0x30   :  { %4137 = shalt.err (!%p4134_p9)
}
  0x31   :  { %s4147_s1 = smov 64   ;;  %s4148_s27 = smov 4  }
  0x32   :  { %55 = dma.hbm_to_vmem [thread:$0]  %s4335_s5, 4096, %s50_s28, [#allocation5], %s4147_s1, %s4147_s1, %s4148_s27  }
  0x33   :  { %4138 = dma.done.wait [#allocation3], 25088  }
  0x34   :  { %4139 = vsyncadd [#allocation3], 4294942208 }
  0x35   :  { %4140 = dma.done.wait [#allocation5], 20480  }
  0x36   :  { %4141 = vsyncadd [#allocation5], 4294946816  ;;  %v3542_v0 = vld [vmem:[#allocation2 + $0x4] ss:$16 sps:$4 sm:$0xff]   ;;  %v3544_v1 = vld [vmem:[#allocation2 + $0xc] ss:$16 sps:$4 sm:$0xff]   ;;  %v91_v40 = vlaneseq }
  0x37   :  { %1371 = vmatprep.subr.bf16.mxu0 %v3542_v0  ;;  %v3546_v2 = vld [vmem:[#allocation2] ss:$16 sps:$4 sm:$0xff]   ;;  %v3547_v3 = vld [vmem:[#allocation2 + $0x8] ss:$16 sps:$4 sm:$0xff]   ;;  %1535 = vmatprep.subr.bf16.mxu1 %v3544_v1  ;;  %v3548_v4 = vld [vmem:[#allocation2 + $0x24] ss:$16 sps:$4 sm:$0xff]  }
  0x38   :  { %1372 = vmatpush1.bf16.msra.mxu0 %v3546_v2  ;;  %1536 = vmatpush1.bf16.msra.mxu1 %v3547_v3  ;;  %v3550_v5 = vld [vmem:[#allocation2 + $0x2c] ss:$16 sps:$4 sm:$0xff]   ;;  %v3552_v6 = vld [vmem:[#allocation2 + $0x20] ss:$16 sps:$4 sm:$0xff]   ;;  %v3553_v7 = vld [vmem:[#allocation2 + $0x28] ss:$16 sps:$4 sm:$0xff]  }
  0x39   :  { %1373 = vmatprep.subr.bf16.mxu0 %v3548_v4  ;;  %1537 = vmatprep.subr.bf16.mxu1 %v3550_v5  ;;  %v3554_v8 = vld [vmem:[#allocation2 + $0x44] ss:$16 sps:$4 sm:$0xff]   ;;  %v3556_v9 = vld [vmem:[#allocation2 + $0x4c] ss:$16 sps:$4 sm:$0xff]   ;;  %v3558_v10 = vld [vmem:[#allocation2 + $0x40] ss:$16 sps:$4 sm:$0xff]  }
  0x3a   :  { %v3559_v11 = vld [vmem:[#allocation2 + $0x48] ss:$16 sps:$4 sm:$0xff]   ;;  %v3560_v12 = vld [vmem:[#allocation2 + $0x64] ss:$16 sps:$4 sm:$0xff]   ;;  %v3562_v13 = vld [vmem:[#allocation2 + $0x6c] ss:$16 sps:$4 sm:$0xff]  }
  0x3b   :  { %v3564_v14 = vld [vmem:[#allocation2 + $0x60] ss:$16 sps:$4 sm:$0xff]   ;;  %v3565_v15 = vld [vmem:[#allocation2 + $0x68] ss:$16 sps:$4 sm:$0xff]   ;;  %v3566_v16 = vld [vmem:[#allocation2 + $0x84] ss:$16 sps:$4 sm:$0xff]  }
  0x3c   :  { %1374 = vmatpush1.bf16.msra.mxu0 %v3552_v6  ;;  %1538 = vmatpush1.bf16.msra.mxu1 %v3553_v7  ;;  %v3568_v17 = vld [vmem:[#allocation2 + $0x8c] ss:$16 sps:$4 sm:$0xff]   ;;  %v3570_v18 = vld [vmem:[#allocation2 + $0x80] ss:$16 sps:$4 sm:$0xff]   ;;  %v3571_v19 = vld [vmem:[#allocation2 + $0x88] ss:$16 sps:$4 sm:$0xff]  }
  0x3d   :  { %1375 = vmatprep.subr.bf16.mxu0 %v3554_v8  ;;  %1539 = vmatprep.subr.bf16.mxu1 %v3556_v9  ;;  %v3572_v20 = vld [vmem:[#allocation2 + $0xa4] ss:$16 sps:$4 sm:$0xff]   ;;  %v3574_v21 = vld [vmem:[#allocation2 + $0xac] ss:$16 sps:$4 sm:$0xff]   ;;  %v3576_v22 = vld [vmem:[#allocation2 + $0xa0] ss:$16 sps:$4 sm:$0xff]  }
  0x3e   :  { %v3577_v23 = vld [vmem:[#allocation2 + $0xa8] ss:$16 sps:$4 sm:$0xff]   ;;  %v3578_v24 = vld [vmem:[#allocation2 + $0xc4] ss:$16 sps:$4 sm:$0xff]   ;;  %v3580_v25 = vld [vmem:[#allocation2 + $0xcc] ss:$16 sps:$4 sm:$0xff]  }
  0x3f   :  { %v3582_v26 = vld [vmem:[#allocation2 + $0xc0] ss:$16 sps:$4 sm:$0xff]   ;;  %v3583_v27 = vld [vmem:[#allocation2 + $0xc8] ss:$16 sps:$4 sm:$0xff]   ;;  %v3584_v28 = vld [vmem:[#allocation2 + $0xe4] ss:$16 sps:$4 sm:$0xff]  }
  0x40   :  { %1376 = vmatpush1.bf16.msra.mxu0 %v3558_v10  ;;  %1540 = vmatpush1.bf16.msra.mxu1 %v3559_v11  ;;  %v3586_v29 = vld [vmem:[#allocation2 + $0xec] ss:$16 sps:$4 sm:$0xff]   ;;  %v3588_v30 = vld [vmem:[#allocation2 + $0xe0] ss:$16 sps:$4 sm:$0xff]   ;;  %v3589_v31 = vld [vmem:[#allocation2 + $0xe8] ss:$16 sps:$4 sm:$0xff]  }
  0x41   :  { %1377 = vmatprep.subr.bf16.mxu0 %v3560_v12  ;;  %1541 = vmatprep.subr.bf16.mxu1 %v3562_v13  ;;  %v3590_v32 = vld [vmem:[#allocation2 + $0x104] ss:$16 sps:$4 sm:$0xff]   ;;  %v3592_v33 = vld [vmem:[#allocation2 + $0x10c] ss:$16 sps:$4 sm:$0xff]   ;;  %v3594_v34 = vld [vmem:[#allocation2 + $0x100] ss:$16 sps:$4 sm:$0xff]  }
  0x42   :  { %v3595_v35 = vld [vmem:[#allocation2 + $0x108] ss:$16 sps:$4 sm:$0xff]   ;;  %v3596_v36 = vld [vmem:[#allocation2 + $0x124] ss:$16 sps:$4 sm:$0xff]   ;;  %v3598_v37 = vld [vmem:[#allocation2 + $0x12c] ss:$16 sps:$4 sm:$0xff]  }
  0x43   :  { %v4149_v38 = vmov 1983009808   ;;  %v3600_v41 = vld [vmem:[#allocation2 + $0x120] ss:$16 sps:$4 sm:$0xff]   ;;  %v3601_v42 = vld [vmem:[#allocation2 + $0x128] ss:$16 sps:$4 sm:$0xff]  }
  0x44   :  { %1378 = vmatpush1.bf16.msra.mxu0 %v3564_v14  ;;  %1542 = vmatpush1.bf16.msra.mxu1 %v3565_v15  ;;  %v89_v39 = vunpack.c.l.s4 %v4149_v38  ;;  %v3602_v43 = vld [vmem:[#allocation2 + $0x144] ss:$16 sps:$4 sm:$0xff]   ;;  %v3604_v44 = vld [vmem:[#allocation2 + $0x14c] ss:$16 sps:$4 sm:$0xff]   ;;  %v4235_v46 = vshrl.u32 %v91_v40, 7  ;;  %vm1367_vm0 = vcmask 130048  }
  0x45   :  { %1379 = vmatprep.subr.bf16.mxu0 %v3566_v16  ;;  %1543 = vmatprep.subr.bf16.mxu1 %v3568_v17  ;;  %v3606_v47 = vld [vmem:[#allocation2 + $0x140] ss:$16 sps:$4 sm:$0xff]   ;;  %v3607_v48 = vld [vmem:[#allocation2 + $0x148] ss:$16 sps:$4 sm:$0xff]   ;;  %v3608_v49 = vld [vmem:[#allocation2 + $0x164] ss:$16 sps:$4 sm:$0xff]  }
  0x46   :  { %v90_v45 = vunpack.c.0.s8 %v89_v39  ;;  %v3610_v50 = vld [vmem:[#allocation2 + $0x16c] ss:$16 sps:$4 sm:$0xff]   ;;  %v3612_v51 = vld [vmem:[#allocation2 + $0x160] ss:$16 sps:$4 sm:$0xff]   ;;  %v3613_v52 = vld [vmem:[#allocation2 + $0x168] ss:$16 sps:$4 sm:$0xff]  }
  0x47   :  { %v3614_v54 = vld [vmem:[#allocation2 + $0x184] ss:$16 sps:$4 sm:$0xff]   ;;  %v3638_v55 = vld [vmem:[%s4330_s0] ss:$14 sps:$4 sm:$0xff]   ;;  %v3641_v56 = vld [vmem:[%s4330_s0 + $0x1c] ss:$14 sps:$4 sm:$0xff]  }
  0x48   :  { %1380 = vmatpush1.bf16.msra.mxu0 %v3570_v18  ;;  %1544 = vmatpush1.bf16.msra.mxu1 %v3571_v19  ;;  %v4238_v53 = vsub.s32 %v90_v45, %v4235_v46  ;;  %v3616_v57 = vld [vmem:[#allocation2 + $0x18c] ss:$16 sps:$4 sm:$0xff]   ;;  %v3618_v60 = vld [vmem:[#allocation2 + $0x180] ss:$16 sps:$4 sm:$0xff]   ;;  %v3619_v61 = vld [vmem:[#allocation2 + $0x188] ss:$16 sps:$4 sm:$0xff]  }
  0x49   :  { %1381 = vmatprep.subr.bf16.mxu0 %v3572_v20  ;;  %1545 = vmatprep.subr.bf16.mxu1 %v3574_v21  ;;  %v3620_v62 = vld [vmem:[#allocation2 + $0x1a4] ss:$16 sps:$4 sm:$0xff]   ;;  %v3622_v0 = vld [vmem:[#allocation2 + $0x1ac] ss:$16 sps:$4 sm:$0xff]   ;;  %v3624_v2 = vld [vmem:[#allocation2 + $0x1a0] ss:$16 sps:$4 sm:$0xff]  }
  0x4a   :  { %v94_v58 = vrot.slane %v3638_v55, %v4238_v53  ;;  %v108_v59 = vrot.slane %v3641_v56, %v4238_v53  ;;  %v3625_v3 = vld [vmem:[#allocation2 + $0x1a8] ss:$16 sps:$4 sm:$0xff]   ;;  %v3626_v4 = vld [vmem:[#allocation2 + $0x1c4] ss:$16 sps:$4 sm:$0xff]   ;;  %v3628_v5 = vld [vmem:[#allocation2 + $0x1cc] ss:$16 sps:$4 sm:$0xff]  }
  0x4b   :  { %v3640_v6 = vld [vmem:[%s4330_s0 + $0x4] ss:$14 sps:$4 sm:$0xff]   ;;  %v3643_v7 = vld [vmem:[%s4330_s0 + $0x20] ss:$14 sps:$4 sm:$0xff]   ;;  %v3631_v9 = vld [vmem:[#allocation2 + $0x1c8] ss:$16 sps:$4 sm:$0xff]  }
  0x4c   :  { %1382 = vmatpush1.bf16.msra.mxu0 %v3576_v22  ;;  %1546 = vmatpush1.bf16.msra.mxu1 %v3577_v23  ;;  %v117_v63 = vcombine.high %v94_v58, %v108_v59  ;;  %v3630_v8 = vld [vmem:[#allocation2 + $0x1c0] ss:$16 sps:$4 sm:$0xff]   ;;  %v3632_v10 = vld [vmem:[#allocation2 + $0x1e4] ss:$16 sps:$4 sm:$0xff]   ;;  %v3634_v11 = vld [vmem:[#allocation2 + $0x1ec] ss:$16 sps:$4 sm:$0xff]   ;;  %v4255_v12 = vrot.slane %v3640_v6, %v4238_v53  ;;  %v4258_v13 = vrot.slane %v3643_v7, %v4238_v53 }
  0x4d   :  { %1383 = vmatprep.subr.bf16.mxu0 %v3578_v24  ;;  %1547 = vmatprep.subr.bf16.mxu1 %v3580_v25  ;;  %v3636_v14 = vld [vmem:[#allocation2 + $0x1e0] ss:$16 sps:$4 sm:$0xff]   ;;  %v3637_v15 = vld [vmem:[#allocation2 + $0x1e8] ss:$16 sps:$4 sm:$0xff]   ;;  %v116_v16 = vcombine.low %v94_v58, %v108_v59  ;;  %v3646_v17 = vld [vmem:[#allocation2 + $0x204] ss:$16 sps:$4 sm:$0xff]  }
  0x4e   :  { %v163_v1 = vpack.c.bf16 %v117_v63, %v117_v63  ;;  %v3649_v18 = vld [vmem:[#allocation2 + $0x20c] ss:$16 sps:$4 sm:$0xff]   ;;  %v119_v19 = vcombine.high %v4255_v12, %v4258_v13  ;;  %v3644_v20 = vld [vmem:[#allocation2 + $0x200] ss:$16 sps:$4 sm:$0xff]   ;;  %v3647_v21 = vld [vmem:[#allocation2 + $0x208] ss:$16 sps:$4 sm:$0xff]  }
  0x4f   :  { %v162_v22 = vpack.c.bf16 %v116_v16, %v116_v16  ;;  %v3652_v23 = vld [vmem:[#allocation2 + $0x224] ss:$16 sps:$4 sm:$0xff]   ;;  %v3655_v24 = vld [vmem:[#allocation2 + $0x22c] ss:$16 sps:$4 sm:$0xff]   ;;  %v3668_v38 = vld [vmem:[#allocation2 + $0x280] ss:$16 sps:$4 sm:$0xff]  }
  0x50   :  { %1384 = vmatpush1.bf16.msra.mxu0 %v3582_v26  ;;  %1548 = vmatpush1.bf16.msra.mxu1 %v3583_v27  ;;  %v165_v25 = vpack.c.bf16 %v119_v19, %v119_v19  ;;  %v3650_v26 = vld [vmem:[#allocation2 + $0x220] ss:$16 sps:$4 sm:$0xff]   ;;  %v3653_v27 = vld [vmem:[#allocation2 + $0x228] ss:$16 sps:$4 sm:$0xff]   ;;  %v3676_v40 = vld [vmem:[#allocation2 + $0x2a4] ss:$16 sps:$4 sm:$0xff]  }
  0x51   :  { %1385 = vmatprep.subr.bf16.mxu0 %v3584_v28  ;;  %1549 = vmatprep.subr.bf16.mxu1 %v3586_v29  ;;  %v3658_v28 = vld [vmem:[#allocation2 + $0x244] ss:$16 sps:$4 sm:$0xff]   ;;  %v3661_v29 = vld [vmem:[#allocation2 + $0x24c] ss:$16 sps:$4 sm:$0xff]   ;;  %v3671_v39 = vld [vmem:[#allocation2 + $0x288] ss:$16 sps:$4 sm:$0xff]  }
  0x52   :  { %1403 = vmatprep.mubr.bf16.mxu0 %v163_v1  ;;  %1567 = vmatprep.mubr.bf16.mxu1 %v163_v1  ;;  %v3685_v45 = vld [vmem:[#allocation2 + $0x2cc] ss:$16 sps:$4 sm:$0xff]   ;;  %v3692_v56 = vld [vmem:[#allocation2 + $0x300] ss:$16 sps:$4 sm:$0xff]   ;;  %v3700_v58 = vld [vmem:[#allocation2 + $0x324] ss:$16 sps:$4 sm:$0xff]  }
  0x53   :  { %v3697_v55 = vld [vmem:[#allocation2 + $0x30c] ss:$16 sps:$4 sm:$0xff]   ;;  %v3707_v1 = vld [vmem:[#allocation2 + $0x348] ss:$16 sps:$4 sm:$0xff]   ;;  %v3718_v6 = vld [vmem:[#allocation2 + $0x384] ss:$16 sps:$4 sm:$0xff]  }
  0x54   :  { %1386 = vmatpush1.bf16.msra.mxu0 %v3588_v30  ;;  %1550 = vmatpush1.bf16.msra.mxu1 %v3589_v31  ;;  %v3656_v30 = vld [vmem:[#allocation2 + $0x240] ss:$16 sps:$4 sm:$0xff]   ;;  %v3659_v31 = vld [vmem:[#allocation2 + $0x248] ss:$16 sps:$4 sm:$0xff]   ;;  %v3703_v59 = vld [vmem:[#allocation2 + $0x32c] ss:$16 sps:$4 sm:$0xff]  }
  0x55   :  { %1387 = vmatprep.subr.bf16.mxu0 %v3590_v32  ;;  %1551 = vmatprep.subr.bf16.mxu1 %v3592_v33  ;;  %v3664_v32 = vld [vmem:[#allocation2 + $0x264] ss:$16 sps:$4 sm:$0xff]   ;;  %v3667_v33 = vld [vmem:[#allocation2 + $0x26c] ss:$16 sps:$4 sm:$0xff]   ;;  %v3731_v19 = vld [vmem:[#allocation2 + $0x3c8] ss:$16 sps:$4 sm:$0xff]  }
  0x56   :  { %v3709_v63 = vld [vmem:[#allocation2 + $0x34c] ss:$16 sps:$4 sm:$0xff]   ;;  %v3730_v16 = vld [vmem:[#allocation2 + $0x3c4] ss:$16 sps:$4 sm:$0xff]  }
  0x57   :  { %v3721_v7 = vld [vmem:[#allocation2 + $0x38c] ss:$16 sps:$4 sm:$0xff]  }
  0x58   :  { %1388 = vmatpush1.bf16.msra.mxu0 %v3594_v34  ;;  %1552 = vmatpush1.bf16.msra.mxu1 %v3595_v35  ;;  %v3662_v34 = vld [vmem:[#allocation2 + $0x260] ss:$16 sps:$4 sm:$0xff]   ;;  %v3665_v35 = vld [vmem:[#allocation2 + $0x268] ss:$16 sps:$4 sm:$0xff]  }
  0x59   :  { %1389 = vmatprep.subr.bf16.mxu0 %v3596_v36  ;;  %1553 = vmatprep.subr.bf16.mxu1 %v3598_v37  ;;  %v3670_v36 = vld [vmem:[#allocation2 + $0x284] ss:$16 sps:$4 sm:$0xff]   ;;  %v3673_v37 = vld [vmem:[#allocation2 + $0x28c] ss:$16 sps:$4 sm:$0xff]  }
  0x5c   :  { %1390 = vmatpush1.bf16.msra.mxu0 %v3600_v41  ;;  %1554 = vmatpush1.bf16.msra.mxu1 %v3601_v42  ;;  %v3679_v41 = vld [vmem:[#allocation2 + $0x2ac] ss:$16 sps:$4 sm:$0xff]   ;;  %v3674_v42 = vld [vmem:[#allocation2 + $0x2a0] ss:$16 sps:$4 sm:$0xff]  }
  0x5d   :  { %1391 = vmatprep.subr.bf16.mxu0 %v3602_v43  ;;  %1555 = vmatprep.subr.bf16.mxu1 %v3604_v44  ;;  %v3677_v43 = vld [vmem:[#allocation2 + $0x2a8] ss:$16 sps:$4 sm:$0xff]   ;;  %v3682_v44 = vld [vmem:[#allocation2 + $0x2c4] ss:$16 sps:$4 sm:$0xff]  }
  0x60   :  { %1392 = vmatpush1.bf16.msra.mxu0 %v3606_v47  ;;  %1556 = vmatpush1.bf16.msra.mxu1 %v3607_v48  ;;  %v3680_v47 = vld [vmem:[#allocation2 + $0x2c0] ss:$16 sps:$4 sm:$0xff]   ;;  %v3683_v48 = vld [vmem:[#allocation2 + $0x2c8] ss:$16 sps:$4 sm:$0xff]  }
  0x61   :  { %1393 = vmatprep.subr.bf16.mxu0 %v3608_v49  ;;  %1557 = vmatprep.subr.bf16.mxu1 %v3610_v50  ;;  %v3688_v49 = vld [vmem:[#allocation2 + $0x2e4] ss:$16 sps:$4 sm:$0xff]   ;;  %v3691_v50 = vld [vmem:[#allocation2 + $0x2ec] ss:$16 sps:$4 sm:$0xff]  }
  0x64   :  { %1394 = vmatpush1.bf16.msra.mxu0 %v3612_v51  ;;  %1558 = vmatpush1.bf16.msra.mxu1 %v3613_v52  ;;  %v3686_v51 = vld [vmem:[#allocation2 + $0x2e0] ss:$16 sps:$4 sm:$0xff]   ;;  %v3689_v52 = vld [vmem:[#allocation2 + $0x2e8] ss:$16 sps:$4 sm:$0xff]  }
  0x65   :  { %1395 = vmatprep.subr.bf16.mxu0 %v3614_v54  ;;  %1559 = vmatprep.subr.bf16.mxu1 %v3616_v57  ;;  %v3694_v54 = vld [vmem:[#allocation2 + $0x304] ss:$16 sps:$4 sm:$0xff]   ;;  %v3695_v57 = vld [vmem:[#allocation2 + $0x308] ss:$16 sps:$4 sm:$0xff]  }
  0x68   :  { %1396 = vmatpush1.bf16.msra.mxu0 %v3618_v60  ;;  %1560 = vmatpush1.bf16.msra.mxu1 %v3619_v61  ;;  %v3698_v60 = vld [vmem:[#allocation2 + $0x320] ss:$16 sps:$4 sm:$0xff]   ;;  %v3701_v61 = vld [vmem:[#allocation2 + $0x328] ss:$16 sps:$4 sm:$0xff]  }
  0x69   :  { %1397 = vmatprep.subr.bf16.mxu0 %v3620_v62  ;;  %1561 = vmatprep.subr.bf16.mxu1 %v3622_v0  ;;  %v3706_v62 = vld [vmem:[#allocation2 + $0x344] ss:$16 sps:$4 sm:$0xff]   ;;  %v3704_v0 = vld [vmem:[#allocation2 + $0x340] ss:$16 sps:$4 sm:$0xff]  }
  0x6c   :  { %1398 = vmatpush1.bf16.msra.mxu0 %v3624_v2  ;;  %1562 = vmatpush1.bf16.msra.mxu1 %v3625_v3  ;;  %v3712_v2 = vld [vmem:[#allocation2 + $0x364] ss:$16 sps:$4 sm:$0xff]   ;;  %v3715_v3 = vld [vmem:[#allocation2 + $0x36c] ss:$16 sps:$4 sm:$0xff]  }
  0x6d   :  { %1399 = vmatprep.subr.bf16.mxu0 %v3626_v4  ;;  %1563 = vmatprep.subr.bf16.mxu1 %v3628_v5  ;;  %v3710_v4 = vld [vmem:[#allocation2 + $0x360] ss:$16 sps:$4 sm:$0xff]   ;;  %v3713_v5 = vld [vmem:[#allocation2 + $0x368] ss:$16 sps:$4 sm:$0xff]  }
  0x70   :  { %1400 = vmatpush1.bf16.msra.mxu0 %v3630_v8  ;;  %1564 = vmatpush1.bf16.msra.mxu1 %v3631_v9  ;;  %v3716_v8 = vld [vmem:[#allocation2 + $0x380] ss:$16 sps:$4 sm:$0xff]   ;;  %v3719_v9 = vld [vmem:[#allocation2 + $0x388] ss:$16 sps:$4 sm:$0xff]  }
  0x71   :  { %1401 = vmatprep.subr.bf16.mxu0 %v3632_v10  ;;  %1565 = vmatprep.subr.bf16.mxu1 %v3634_v11  ;;  %v3724_v10 = vld [vmem:[#allocation2 + $0x3a4] ss:$16 sps:$4 sm:$0xff]   ;;  %v3727_v11 = vld [vmem:[#allocation2 + $0x3ac] ss:$16 sps:$4 sm:$0xff]  }
  0x74   :  { %1402 = vmatpush1.bf16.msra.mxu0 %v3636_v14  ;;  %1566 = vmatpush1.bf16.msra.mxu1 %v3637_v15  ;;  %v3722_v14 = vld [vmem:[#allocation2 + $0x3a0] ss:$16 sps:$4 sm:$0xff]   ;;  %v3725_v15 = vld [vmem:[#allocation2 + $0x3a8] ss:$16 sps:$4 sm:$0xff]  }
  0x75   :  { %1412 = vmatprep.subr.bf16.mxu0 %v3646_v17  ;;  %1576 = vmatprep.subr.bf16.mxu1 %v3649_v18  ;;  %v3733_v17 = vld [vmem:[#allocation2 + $0x3cc] ss:$16 sps:$4 sm:$0xff]   ;;  %v3728_v18 = vld [vmem:[#allocation2 + $0x3c0] ss:$16 sps:$4 sm:$0xff]  }
  0x77   :  { %1404 = vmatmul.mubr.bf16.vlgmr.msra.gmra.mrb[0].mxu0 %v162_v22  ;;  %1568 = vmatmul.mubr.bf16.vlgmr.msra.gmra.mrb[0].mxu1 %v162_v22  ;;  %v3734_v22 = vld [vmem:[#allocation2 + $0x3e0] ss:$16 sps:$4 sm:$0xff]  }
  0x78   :  { %1413 = vmatpush1.bf16.msra.mxu0 %v3644_v20  ;;  %1577 = vmatpush1.bf16.msra.mxu1 %v3647_v21  ;;  %v3736_v20 = vld [vmem:[#allocation2 + $0x3e4] ss:$16 sps:$4 sm:$0xff]   ;;  %v3739_v21 = vld [vmem:[#allocation2 + $0x3ec] ss:$16 sps:$4 sm:$0xff]  }
  0x79   :  { %1414 = vmatprep.subr.bf16.mxu0 %v3652_v23  ;;  %1578 = vmatprep.subr.bf16.mxu1 %v3655_v24  ;;  %v3737_v23 = vld [vmem:[#allocation2 + $0x3e8] ss:$16 sps:$4 sm:$0xff]   ;;  %v118_v24 = vcombine.low %v4255_v12, %v4258_v13  ;;  %v3754_v12 = vld [vmem:[#allocation2 + $0x444] ss:$16 sps:$4 sm:$0xff]  }
  0x7a   :  { %1444 = vmatprep.mubr.bf16.mxu0 %v165_v25  ;;  %1608 = vmatprep.mubr.bf16.mxu1 %v165_v25  ;;  %v3742_v25 = vld [vmem:[#allocation2 + $0x404] ss:$16 sps:$4 sm:$0xff]  }
  0x7b   :  { %v3836_v13 = vld [vmem:[%s4330_s0 + $0x8] ss:$14 sps:$4 sm:$0xff]  }
  0x7c   :  { %1415 = vmatpush1.bf16.msra.mxu0 %v3650_v26  ;;  %1579 = vmatpush1.bf16.msra.mxu1 %v3653_v27  ;;  %v3745_v26 = vld [vmem:[#allocation2 + $0x40c] ss:$16 sps:$4 sm:$0xff]   ;;  %v3740_v27 = vld [vmem:[#allocation2 + $0x400] ss:$16 sps:$4 sm:$0xff]  }
  0x7d   :  { %1416 = vmatprep.subr.bf16.mxu0 %v3658_v28  ;;  %1580 = vmatprep.subr.bf16.mxu1 %v3661_v29  ;;  %v3743_v28 = vld [vmem:[#allocation2 + $0x408] ss:$16 sps:$4 sm:$0xff]   ;;  %v164_v29 = vpack.c.bf16 %v118_v24, %v118_v24  ;;  %v3818_v24 = vld [vmem:[#allocation2 + $0x5a0] ss:$16 sps:$4 sm:$0xff]  }
  0x80   :  { %1417 = vmatpush1.bf16.msra.mxu0 %v3656_v30  ;;  %1581 = vmatpush1.bf16.msra.mxu1 %v3659_v31  ;;  %v3748_v30 = vld [vmem:[#allocation2 + $0x424] ss:$16 sps:$4 sm:$0xff]   ;;  %v3751_v31 = vld [vmem:[#allocation2 + $0x42c] ss:$16 sps:$4 sm:$0xff]  }
  0x81   :  { %1418 = vmatprep.subr.bf16.mxu0 %v3664_v32  ;;  %1582 = vmatprep.subr.bf16.mxu1 %v3667_v33  ;;  %v3746_v32 = vld [vmem:[#allocation2 + $0x420] ss:$16 sps:$4 sm:$0xff]   ;;  %v3749_v33 = vld [vmem:[#allocation2 + $0x428] ss:$16 sps:$4 sm:$0xff]  }
  0x84   :  { %1419 = vmatpush1.bf16.msra.mxu0 %v3662_v34  ;;  %1583 = vmatpush1.bf16.msra.mxu1 %v3665_v35  ;;  %v3757_v34 = vld [vmem:[#allocation2 + $0x44c] ss:$16 sps:$4 sm:$0xff]   ;;  %v3839_v35 = vld [vmem:[%s4330_s0 + $0x24] ss:$14 sps:$4 sm:$0xff]  }
  0x85   :  { %1420 = vmatprep.subr.bf16.mxu0 %v3670_v36  ;;  %1584 = vmatprep.subr.bf16.mxu1 %v3673_v37  ;;  %v4271_v36 = vrot.slane %v3836_v13, %v4238_v53  ;;  %v3752_v37 = vld [vmem:[#allocation2 + $0x440] ss:$16 sps:$4 sm:$0xff]   ;;  %v3844_v13 = vld [vmem:[#allocation2 + $0x604] ss:$16 sps:$4 sm:$0xff]  }
  0x88   :  { %1421 = vmatpush1.bf16.msra.mxu0 %v3668_v38  ;;  %1585 = vmatpush1.bf16.msra.mxu1 %v3671_v39  ;;  %v3755_v38 = vld [vmem:[#allocation2 + $0x448] ss:$16 sps:$4 sm:$0xff]   ;;  %v4274_v39 = vrot.slane %v3839_v35, %v4238_v53 }
  0x89   :  { %1422 = vmatprep.subr.bf16.mxu0 %v3676_v40  ;;  %1586 = vmatprep.subr.bf16.mxu1 %v3679_v41  ;;  %v3760_v40 = vld [vmem:[#allocation2 + $0x464] ss:$16 sps:$4 sm:$0xff]   ;;  %v3763_v41 = vld [vmem:[#allocation2 + $0x46c] ss:$16 sps:$4 sm:$0xff]  }
  0x8a   :  { %v3838_v35 = vld [vmem:[%s4330_s0 + $0xc] ss:$14 sps:$4 sm:$0x33]  }
  0x8c   :  { %1423 = vmatpush1.bf16.msra.mxu0 %v3674_v42  ;;  %1587 = vmatpush1.bf16.msra.mxu1 %v3677_v43  ;;  %v153_v42 = vcombine.high %v4271_v36, %v4274_v39  ;;  %v3758_v43 = vld [vmem:[#allocation2 + $0x460] ss:$16 sps:$4 sm:$0xff]  }
  0x8d   :  { %1424 = vmatprep.subr.bf16.mxu0 %v3682_v44  ;;  %1588 = vmatprep.subr.bf16.mxu1 %v3685_v45  ;;  %v3761_v44 = vld [vmem:[#allocation2 + $0x468] ss:$16 sps:$4 sm:$0xff]  }
  0x8e   :  { %v167_v45 = vpack.c.bf16 %v153_v42, %v153_v42  ;;  %v137_v42 = vrot.slane %v3838_v35, %v4238_v53  ;;  %v3931_v35 = vld [vmem:[#allocation4 + $0x1ac] ss:$16 sps:$4 sm:$0xff]  }
  0x90   :  { %1425 = vmatpush1.bf16.msra.mxu0 %v3680_v47  ;;  %1589 = vmatpush1.bf16.msra.mxu1 %v3683_v48  ;;  %v3766_v47 = vld [vmem:[#allocation2 + $0x484] ss:$16 sps:$4 sm:$0xff]   ;;  %v3769_v48 = vld [vmem:[#allocation2 + $0x48c] ss:$16 sps:$4 sm:$0xff]  }
  0x91   :  { %1426 = vmatprep.subr.bf16.mxu0 %v3688_v49  ;;  %1590 = vmatprep.subr.bf16.mxu1 %v3691_v50  ;;  %v3764_v49 = vld [vmem:[#allocation2 + $0x480] ss:$16 sps:$4 sm:$0xff]   ;;  %v3767_v50 = vld [vmem:[#allocation2 + $0x488] ss:$16 sps:$4 sm:$0xff]  }
  0x94   :  { %1427 = vmatpush1.bf16.msra.mxu0 %v3686_v51  ;;  %1591 = vmatpush1.bf16.msra.mxu1 %v3689_v52  ;;  %v3772_v51 = vld [vmem:[#allocation2 + $0x4a4] ss:$16 sps:$4 sm:$0xff]   ;;  %v3775_v52 = vld [vmem:[#allocation2 + $0x4ac] ss:$16 sps:$4 sm:$0xff]  }
  0x95   :  { %1428 = vmatprep.subr.bf16.mxu0 %v3694_v54  ;;  %1592 = vmatprep.subr.bf16.mxu1 %v3697_v55  ;;  %v3770_v54 = vld [vmem:[#allocation2 + $0x4a0] ss:$16 sps:$4 sm:$0xff]   ;;  %v3773_v55 = vld [vmem:[#allocation2 + $0x4a8] ss:$16 sps:$4 sm:$0xff]  }
  0x98   :  { %1429 = vmatpush1.bf16.msra.mxu0 %v3692_v56  ;;  %1593 = vmatpush1.bf16.msra.mxu1 %v3695_v57  ;;  %v3778_v56 = vld [vmem:[#allocation2 + $0x4c4] ss:$16 sps:$4 sm:$0xff]   ;;  %v3781_v57 = vld [vmem:[#allocation2 + $0x4cc] ss:$16 sps:$4 sm:$0xff]  }
  0x99   :  { %1430 = vmatprep.subr.bf16.mxu0 %v3700_v58  ;;  %1594 = vmatprep.subr.bf16.mxu1 %v3703_v59  ;;  %v3776_v58 = vld [vmem:[#allocation2 + $0x4c0] ss:$16 sps:$4 sm:$0xff]   ;;  %v3779_v59 = vld [vmem:[#allocation2 + $0x4c8] ss:$16 sps:$4 sm:$0xff]  }
  0x9c   :  { %1431 = vmatpush1.bf16.msra.mxu0 %v3698_v60  ;;  %1595 = vmatpush1.bf16.msra.mxu1 %v3701_v61  ;;  %v3784_v60 = vld [vmem:[#allocation2 + $0x4e4] ss:$16 sps:$4 sm:$0xff]   ;;  %v3787_v61 = vld [vmem:[#allocation2 + $0x4ec] ss:$16 sps:$4 sm:$0xff]  }
  0x9d   :  { %1432 = vmatprep.subr.bf16.mxu0 %v3706_v62  ;;  %1596 = vmatprep.subr.bf16.mxu1 %v3709_v63  ;;  %v3782_v62 = vld [vmem:[#allocation2 + $0x4e0] ss:$16 sps:$4 sm:$0xff]   ;;  %v3785_v63 = vld [vmem:[#allocation2 + $0x4e8] ss:$16 sps:$4 sm:$0xff]  }
  0xa0   :  { %1433 = vmatpush1.bf16.msra.mxu0 %v3704_v0  ;;  %1597 = vmatpush1.bf16.msra.mxu1 %v3707_v1  ;;  %v3790_v0 = vld [vmem:[#allocation2 + $0x504] ss:$16 sps:$4 sm:$0xff]   ;;  %v3793_v1 = vld [vmem:[#allocation2 + $0x50c] ss:$16 sps:$4 sm:$0xff]  }
  0xa1   :  { %1434 = vmatprep.subr.bf16.mxu0 %v3712_v2  ;;  %1598 = vmatprep.subr.bf16.mxu1 %v3715_v3  ;;  %v3788_v2 = vld [vmem:[#allocation2 + $0x500] ss:$16 sps:$4 sm:$0xff]   ;;  %v3791_v3 = vld [vmem:[#allocation2 + $0x508] ss:$16 sps:$4 sm:$0xff]  }
  0xa4   :  { %1435 = vmatpush1.bf16.msra.mxu0 %v3710_v4  ;;  %1599 = vmatpush1.bf16.msra.mxu1 %v3713_v5  ;;  %v3796_v4 = vld [vmem:[#allocation2 + $0x524] ss:$16 sps:$4 sm:$0xff]   ;;  %v3799_v5 = vld [vmem:[#allocation2 + $0x52c] ss:$16 sps:$4 sm:$0xff]  }
  0xa5   :  { %1436 = vmatprep.subr.bf16.mxu0 %v3718_v6  ;;  %1600 = vmatprep.subr.bf16.mxu1 %v3721_v7  ;;  %v3794_v6 = vld [vmem:[#allocation2 + $0x520] ss:$16 sps:$4 sm:$0xff]   ;;  %v3797_v7 = vld [vmem:[#allocation2 + $0x528] ss:$16 sps:$4 sm:$0xff]  }
  0xa8   :  { %1437 = vmatpush1.bf16.msra.mxu0 %v3716_v8  ;;  %1601 = vmatpush1.bf16.msra.mxu1 %v3719_v9  ;;  %v3802_v8 = vld [vmem:[#allocation2 + $0x544] ss:$16 sps:$4 sm:$0xff]   ;;  %v3805_v9 = vld [vmem:[#allocation2 + $0x54c] ss:$16 sps:$4 sm:$0xff]  }
  0xa9   :  { %1438 = vmatprep.subr.bf16.mxu0 %v3724_v10  ;;  %1602 = vmatprep.subr.bf16.mxu1 %v3727_v11  ;;  %v3800_v10 = vld [vmem:[#allocation2 + $0x540] ss:$16 sps:$4 sm:$0xff]   ;;  %v3803_v11 = vld [vmem:[#allocation2 + $0x548] ss:$16 sps:$4 sm:$0xff]  }
  0xac   :  { %1439 = vmatpush1.bf16.msra.mxu0 %v3722_v14  ;;  %1603 = vmatpush1.bf16.msra.mxu1 %v3725_v15  ;;  %v3808_v14 = vld [vmem:[#allocation2 + $0x564] ss:$16 sps:$4 sm:$0xff]   ;;  %v3811_v15 = vld [vmem:[#allocation2 + $0x56c] ss:$16 sps:$4 sm:$0xff]  }
  0xad   :  { %1440 = vmatprep.subr.bf16.mxu0 %v3730_v16  ;;  %1604 = vmatprep.subr.bf16.mxu1 %v3733_v17  ;;  %v3806_v16 = vld [vmem:[#allocation2 + $0x560] ss:$16 sps:$4 sm:$0xff]   ;;  %v3809_v17 = vld [vmem:[#allocation2 + $0x568] ss:$16 sps:$4 sm:$0xff]  }
  0xb0   :  { %1441 = vmatpush1.bf16.msra.mxu0 %v3728_v18  ;;  %1605 = vmatpush1.bf16.msra.mxu1 %v3731_v19  ;;  %v3814_v18 = vld [vmem:[#allocation2 + $0x584] ss:$16 sps:$4 sm:$0xff]   ;;  %v3817_v19 = vld [vmem:[#allocation2 + $0x58c] ss:$16 sps:$4 sm:$0xff]  }
  0xb1   :  { %1442 = vmatprep.subr.bf16.mxu0 %v3736_v20  ;;  %1606 = vmatprep.subr.bf16.mxu1 %v3739_v21  ;;  %v3812_v20 = vld [vmem:[#allocation2 + $0x580] ss:$16 sps:$4 sm:$0xff]   ;;  %v3815_v21 = vld [vmem:[#allocation2 + $0x588] ss:$16 sps:$4 sm:$0xff]  }
  0xb4   :  { %1443 = vmatpush1.bf16.msra.mxu0 %v3734_v22  ;;  %1607 = vmatpush1.bf16.msra.mxu1 %v3737_v23  ;;  %v3820_v22 = vld [vmem:[#allocation2 + $0x5a4] ss:$16 sps:$4 sm:$0xff]   ;;  %v3823_v23 = vld [vmem:[#allocation2 + $0x5ac] ss:$16 sps:$4 sm:$0xff]  }
  0xb5   :  { %1453 = vmatprep.subr.bf16.mxu0 %v3742_v25  ;;  %1617 = vmatprep.subr.bf16.mxu1 %v3745_v26  ;;  %v3821_v25 = vld [vmem:[#allocation2 + $0x5a8] ss:$16 sps:$4 sm:$0xff]   ;;  %v3826_v26 = vld [vmem:[#allocation2 + $0x5c4] ss:$16 sps:$4 sm:$0xff]  }
  0xb7   :  { %1445 = vmatmul.mubr.bf16.vlgmr.msra.gmra.mrb[0].mxu0 %v164_v29  ;;  %1609 = vmatmul.mubr.bf16.vlgmr.msra.gmra.mrb[0].mxu1 %v164_v29  ;;  %v3827_v29 = vld [vmem:[#allocation2 + $0x5c8] ss:$16 sps:$4 sm:$0xff]  }
  0xb8   :  { %1454 = vmatpush1.bf16.msra.mxu0 %v3740_v27  ;;  %1618 = vmatpush1.bf16.msra.mxu1 %v3743_v28  ;;  %v3829_v27 = vld [vmem:[#allocation2 + $0x5cc] ss:$16 sps:$4 sm:$0xff]   ;;  %v3824_v28 = vld [vmem:[#allocation2 + $0x5c0] ss:$16 sps:$4 sm:$0xff]  }
  0xb9   :  { %1455 = vmatprep.subr.bf16.mxu0 %v3748_v30  ;;  %1619 = vmatprep.subr.bf16.mxu1 %v3751_v31  ;;  %v3832_v30 = vld [vmem:[#allocation2 + $0x5e4] ss:$16 sps:$4 sm:$0xff]   ;;  %v3835_v31 = vld [vmem:[#allocation2 + $0x5ec] ss:$16 sps:$4 sm:$0xff]  }
  0xba   :  { %1485 = vmatprep.mubr.bf16.mxu0 %v167_v45  ;;  %1649 = vmatprep.mubr.bf16.mxu1 %v167_v45 }
  0xbc   :  { %1456 = vmatpush1.bf16.msra.mxu0 %v3746_v32  ;;  %1620 = vmatpush1.bf16.msra.mxu1 %v3749_v33  ;;  %v3830_v32 = vld [vmem:[#allocation2 + $0x5e0] ss:$16 sps:$4 sm:$0xff]   ;;  %v3833_v33 = vld [vmem:[#allocation2 + $0x5e8] ss:$16 sps:$4 sm:$0xff]  }
  0xbd   :  { %1457 = vmatprep.subr.bf16.mxu0 %v3754_v12  ;;  %1621 = vmatprep.subr.bf16.mxu1 %v3757_v34  ;;  %v152_v12 = vcombine.low %v4271_v36, %v4274_v39  ;;  %v3847_v34 = vld [vmem:[#allocation2 + $0x60c] ss:$16 sps:$4 sm:$0xff]   ;;  %v3850_v36 = vld [vmem:[#allocation4 + $0x4] ss:$16 sps:$4 sm:$0xff]  }
  0xbe   :  { %v3853_v39 = vld [vmem:[#allocation4 + $0xc] ss:$16 sps:$4 sm:$0xff]  }
  0xc0   :  { %1458 = vmatpush1.bf16.msra.mxu0 %v3752_v37  ;;  %1622 = vmatpush1.bf16.msra.mxu1 %v3755_v38  ;;  %v3841_v37 = vld [vmem:[%s4330_s0 + $0x28] ss:$14 sps:$4 sm:$0x33]   ;;  %v3842_v38 = vld [vmem:[#allocation2 + $0x600] ss:$16 sps:$4 sm:$0xff]  }
  0xc1   :  { %1459 = vmatprep.subr.bf16.mxu0 %v3760_v40  ;;  %1623 = vmatprep.subr.bf16.mxu1 %v3763_v41  ;;  %v3845_v40 = vld [vmem:[#allocation2 + $0x608] ss:$16 sps:$4 sm:$0xff]   ;;  %v166_v41 = vpack.c.bf16 %v152_v12, %v152_v12  ;;  %v3920_v12 = vld [vmem:[#allocation4 + $0x180] ss:$16 sps:$4 sm:$0xff]  }
  0xc4   :  { %1460 = vmatpush1.bf16.msra.mxu0 %v3758_v43  ;;  %1624 = vmatpush1.bf16.msra.mxu1 %v3761_v44  ;;  %v151_v43 = vrot.slane %v3841_v37, %v4238_v53  ;;  %v4150_v44 = vmov 0   ;;  %v3862_v53 = vld [vmem:[#allocation4 + $0x44] ss:$16 sps:$4 sm:$0xff]   ;;  %v3926_v37 = vld [vmem:[#allocation4 + $0x1a0] ss:$16 sps:$4 sm:$0xff]  }
  0xc5   :  { %1461 = vmatprep.subr.bf16.mxu0 %v3766_v47  ;;  %1625 = vmatprep.subr.bf16.mxu1 %v3769_v48  ;;  %v3848_v47 = vld [vmem:[#allocation4] ss:$16 sps:$4 sm:$0xff]   ;;  %v3851_v48 = vld [vmem:[#allocation4 + $0x8] ss:$16 sps:$4 sm:$0xff]  }
  0xc6   :  { %v154_v45 = vcombine.low %v137_v42, %v151_v43  ;;  %v3940_v42 = vld [vmem:[#allocation4 + $0x1e4] ss:$16 sps:$4 sm:$0xff]   ;;  %v3943_v43 = vld [vmem:[#allocation4 + $0x1ec] ss:$16 sps:$4 sm:$0xff]  }
  0xc8   :  { %1462 = vmatpush1.bf16.msra.mxu0 %v3764_v49  ;;  %1626 = vmatpush1.bf16.msra.mxu1 %v3767_v50  ;;  %v168_v49 = vpack.c.bf16 %v154_v45, %v154_v45  ;;  %v3856_v50 = vld [vmem:[#allocation4 + $0x24] ss:$16 sps:$4 sm:$0xff]   ;;  %v3941_v45 = vld [vmem:[#allocation4 + $0x1e8] ss:$16 sps:$4 sm:$0xff]  }
  0xc9   :  { %1463 = vmatprep.subr.bf16.mxu0 %v3772_v51  ;;  %1627 = vmatprep.subr.bf16.mxu1 %v3775_v52  ;;  %v3859_v51 = vld [vmem:[#allocation4 + $0x2c] ss:$16 sps:$4 sm:$0xff]   ;;  %v3854_v52 = vld [vmem:[#allocation4 + $0x20] ss:$16 sps:$4 sm:$0xff]  }
  0xcc   :  { %1464 = vmatpush1.bf16.msra.mxu0 %v3770_v54  ;;  %1628 = vmatpush1.bf16.msra.mxu1 %v3773_v55  ;;  %v3857_v54 = vld [vmem:[#allocation4 + $0x28] ss:$16 sps:$4 sm:$0xff]   ;;  %v3865_v55 = vld [vmem:[#allocation4 + $0x4c] ss:$16 sps:$4 sm:$0xff]  }
  0xcd   :  { %1465 = vmatprep.subr.bf16.mxu0 %v3778_v56  ;;  %1629 = vmatprep.subr.bf16.mxu1 %v3781_v57  ;;  %v3860_v56 = vld [vmem:[#allocation4 + $0x40] ss:$16 sps:$4 sm:$0xff]   ;;  %v3863_v57 = vld [vmem:[#allocation4 + $0x48] ss:$16 sps:$4 sm:$0xff]  }
  0xd0   :  { %1466 = vmatpush1.bf16.msra.mxu0 %v3776_v58  ;;  %1630 = vmatpush1.bf16.msra.mxu1 %v3779_v59  ;;  %v3868_v58 = vld [vmem:[#allocation4 + $0x64] ss:$16 sps:$4 sm:$0xff]   ;;  %v3871_v59 = vld [vmem:[#allocation4 + $0x6c] ss:$16 sps:$4 sm:$0xff]  }
  0xd1   :  { %1467 = vmatprep.subr.bf16.mxu0 %v3784_v60  ;;  %1631 = vmatprep.subr.bf16.mxu1 %v3787_v61  ;;  %v3866_v60 = vld [vmem:[#allocation4 + $0x60] ss:$16 sps:$4 sm:$0xff]   ;;  %v3869_v61 = vld [vmem:[#allocation4 + $0x68] ss:$16 sps:$4 sm:$0xff]  }
  0xd4   :  { %1468 = vmatpush1.bf16.msra.mxu0 %v3782_v62  ;;  %1632 = vmatpush1.bf16.msra.mxu1 %v3785_v63  ;;  %v3874_v62 = vld [vmem:[#allocation4 + $0x84] ss:$16 sps:$4 sm:$0xff]   ;;  %v3877_v63 = vld [vmem:[#allocation4 + $0x8c] ss:$16 sps:$4 sm:$0xff]  }
  0xd5   :  { %1469 = vmatprep.subr.bf16.mxu0 %v3790_v0  ;;  %1633 = vmatprep.subr.bf16.mxu1 %v3793_v1  ;;  %v3872_v0 = vld [vmem:[#allocation4 + $0x80] ss:$16 sps:$4 sm:$0xff]   ;;  %v3875_v1 = vld [vmem:[#allocation4 + $0x88] ss:$16 sps:$4 sm:$0xff]  }
  0xd8   :  { %1470 = vmatpush1.bf16.msra.mxu0 %v3788_v2  ;;  %1634 = vmatpush1.bf16.msra.mxu1 %v3791_v3  ;;  %v3880_v2 = vld [vmem:[#allocation4 + $0xa4] ss:$16 sps:$4 sm:$0xff]   ;;  %v3883_v3 = vld [vmem:[#allocation4 + $0xac] ss:$16 sps:$4 sm:$0xff]  }
  0xd9   :  { %1471 = vmatprep.subr.bf16.mxu0 %v3796_v4  ;;  %1635 = vmatprep.subr.bf16.mxu1 %v3799_v5  ;;  %v3878_v4 = vld [vmem:[#allocation4 + $0xa0] ss:$16 sps:$4 sm:$0xff]   ;;  %v3881_v5 = vld [vmem:[#allocation4 + $0xa8] ss:$16 sps:$4 sm:$0xff]  }
  0xdc   :  { %1472 = vmatpush1.bf16.msra.mxu0 %v3794_v6  ;;  %1636 = vmatpush1.bf16.msra.mxu1 %v3797_v7  ;;  %v3886_v6 = vld [vmem:[#allocation4 + $0xc4] ss:$16 sps:$4 sm:$0xff]   ;;  %v3889_v7 = vld [vmem:[#allocation4 + $0xcc] ss:$16 sps:$4 sm:$0xff]  }
  0xdd   :  { %1473 = vmatprep.subr.bf16.mxu0 %v3802_v8  ;;  %1637 = vmatprep.subr.bf16.mxu1 %v3805_v9  ;;  %v3884_v8 = vld [vmem:[#allocation4 + $0xc0] ss:$16 sps:$4 sm:$0xff]   ;;  %v3887_v9 = vld [vmem:[#allocation4 + $0xc8] ss:$16 sps:$4 sm:$0xff]  }
  0xe0   :  { %1474 = vmatpush1.bf16.msra.mxu0 %v3800_v10  ;;  %1638 = vmatpush1.bf16.msra.mxu1 %v3803_v11  ;;  %v3892_v10 = vld [vmem:[#allocation4 + $0xe4] ss:$16 sps:$4 sm:$0xff]   ;;  %v3895_v11 = vld [vmem:[#allocation4 + $0xec] ss:$16 sps:$4 sm:$0xff]  }
  0xe1   :  { %1475 = vmatprep.subr.bf16.mxu0 %v3808_v14  ;;  %1639 = vmatprep.subr.bf16.mxu1 %v3811_v15  ;;  %v3890_v14 = vld [vmem:[#allocation4 + $0xe0] ss:$16 sps:$4 sm:$0xff]   ;;  %v3893_v15 = vld [vmem:[#allocation4 + $0xe8] ss:$16 sps:$4 sm:$0xff]  }
  0xe4   :  { %1476 = vmatpush1.bf16.msra.mxu0 %v3806_v16  ;;  %1640 = vmatpush1.bf16.msra.mxu1 %v3809_v17  ;;  %v3898_v16 = vld [vmem:[#allocation4 + $0x104] ss:$16 sps:$4 sm:$0xff]   ;;  %v3901_v17 = vld [vmem:[#allocation4 + $0x10c] ss:$16 sps:$4 sm:$0xff]  }
  0xe5   :  { %1477 = vmatprep.subr.bf16.mxu0 %v3814_v18  ;;  %1641 = vmatprep.subr.bf16.mxu1 %v3817_v19  ;;  %v3896_v18 = vld [vmem:[#allocation4 + $0x100] ss:$16 sps:$4 sm:$0xff]   ;;  %v3899_v19 = vld [vmem:[#allocation4 + $0x108] ss:$16 sps:$4 sm:$0xff]  }
  0xe8   :  { %1478 = vmatpush1.bf16.msra.mxu0 %v3812_v20  ;;  %1642 = vmatpush1.bf16.msra.mxu1 %v3815_v21  ;;  %v3904_v20 = vld [vmem:[#allocation4 + $0x124] ss:$16 sps:$4 sm:$0xff]   ;;  %v3907_v21 = vld [vmem:[#allocation4 + $0x12c] ss:$16 sps:$4 sm:$0xff]  }
  0xe9   :  { %1479 = vmatprep.subr.bf16.mxu0 %v3820_v22  ;;  %1643 = vmatprep.subr.bf16.mxu1 %v3823_v23  ;;  %v3902_v22 = vld [vmem:[#allocation4 + $0x120] ss:$16 sps:$4 sm:$0xff]   ;;  %v3905_v23 = vld [vmem:[#allocation4 + $0x128] ss:$16 sps:$4 sm:$0xff]  }
  0xec   :  { %1480 = vmatpush1.bf16.msra.mxu0 %v3818_v24  ;;  %1644 = vmatpush1.bf16.msra.mxu1 %v3821_v25  ;;  %v3910_v24 = vld [vmem:[#allocation4 + $0x144] ss:$16 sps:$4 sm:$0xff]   ;;  %v3913_v25 = vld [vmem:[#allocation4 + $0x14c] ss:$16 sps:$4 sm:$0xff]  }
  0xed   :  { %1481 = vmatprep.subr.bf16.mxu0 %v3826_v26  ;;  %1645 = vmatprep.subr.bf16.mxu1 %v3829_v27  ;;  %v3908_v26 = vld [vmem:[#allocation4 + $0x140] ss:$16 sps:$4 sm:$0xff]   ;;  %v3911_v27 = vld [vmem:[#allocation4 + $0x148] ss:$16 sps:$4 sm:$0xff]  }
  0xf0   :  { %1482 = vmatpush1.bf16.msra.mxu0 %v3824_v28  ;;  %1646 = vmatpush1.bf16.msra.mxu1 %v3827_v29  ;;  %v3916_v28 = vld [vmem:[#allocation4 + $0x164] ss:$16 sps:$4 sm:$0xff]   ;;  %v3919_v29 = vld [vmem:[#allocation4 + $0x16c] ss:$16 sps:$4 sm:$0xff]  }
  0xf1   :  { %1483 = vmatprep.subr.bf16.mxu0 %v3832_v30  ;;  %1647 = vmatprep.subr.bf16.mxu1 %v3835_v31  ;;  %v3914_v30 = vld [vmem:[#allocation4 + $0x160] ss:$16 sps:$4 sm:$0xff]   ;;  %v3917_v31 = vld [vmem:[#allocation4 + $0x168] ss:$16 sps:$4 sm:$0xff]  }
  0xf4   :  { %1484 = vmatpush1.bf16.msra.mxu0 %v3830_v32  ;;  %1648 = vmatpush1.bf16.msra.mxu1 %v3833_v33  ;;  %v3922_v32 = vld [vmem:[#allocation4 + $0x184] ss:$16 sps:$4 sm:$0xff]   ;;  %v3925_v33 = vld [vmem:[#allocation4 + $0x18c] ss:$16 sps:$4 sm:$0xff]  }
  0xf5   :  { %1494 = vmatprep.subr.bf16.mxu0 %v3844_v13  ;;  %1658 = vmatprep.subr.bf16.mxu1 %v3847_v34  ;;  %v3923_v13 = vld [vmem:[#allocation4 + $0x188] ss:$16 sps:$4 sm:$0xff]   ;;  %v3928_v34 = vld [vmem:[#allocation4 + $0x1a4] ss:$16 sps:$4 sm:$0xff]  }
  0xf7   :  { %1486 = vmatmul.mubr.bf16.vlgmr.msra.gmra.mrb[0].mxu0 %v166_v41  ;;  %1650 = vmatmul.mubr.bf16.vlgmr.msra.gmra.mrb[0].mxu1 %v166_v41  ;;  %v3937_v41 = vld [vmem:[#allocation4 + $0x1cc] ss:$16 sps:$4 sm:$0xff]  }
  0xf8   :  { %1495 = vmatpush1.bf16.msra.mxu0 %v3842_v38  ;;  %1659 = vmatpush1.bf16.msra.mxu1 %v3845_v40  ;;  %v3929_v38 = vld [vmem:[#allocation4 + $0x1a8] ss:$16 sps:$4 sm:$0xff]   ;;  %v3934_v40 = vld [vmem:[#allocation4 + $0x1c4] ss:$16 sps:$4 sm:$0xff]  }
  0xf9   :  { %1526 = vmatprep.mubr.bf16.mxu0 %v4150_v44  ;;  %1690 = vmatprep.mubr.bf16.mxu1 %v4150_v44  ;;  %v3938_v44 = vld [vmem:[#allocation4 + $0x1e0] ss:$16 sps:$4 sm:$0xff]  }
  0xfa   :  { %2497 = vmatprep.subr.bf16.mxu0 %v3850_v36  ;;  %2579 = vmatprep.subr.bf16.mxu1 %v3853_v39  ;;  %v3932_v36 = vld [vmem:[#allocation4 + $0x1c0] ss:$16 sps:$4 sm:$0xff]   ;;  %v3935_v39 = vld [vmem:[#allocation4 + $0x1c8] ss:$16 sps:$4 sm:$0xff]  }
 0x103   :  { %3283 = vmatmul.mubr.msk.bf16.vlgmr.msra.gmra.mrb[0].mxu0 %vm1367_vm0, %v168_v49  ;;  %3284 = vmatmul.mubr.msk.bf16.vlgmr.msra.gmra.mrb[0].mxu1 %vm1367_vm0, %v168_v49  ;;  %v369_v49 = vsub.s32 0, %v4235_v46 }
 0x104   :  { %2498 = vmatpush1.bf16.msra.mxu0 %v3848_v47  ;;  %2580 = vmatpush1.bf16.msra.mxu1 %v3851_v48  ;;  %v3946_v47 = vld [vmem:[#allocation4 + $0x204] ss:$16 sps:$4 sm:$0xff]   ;;  %v3949_v48 = vld [vmem:[#allocation4 + $0x20c] ss:$16 sps:$4 sm:$0xff]  }
 0x105   :  { %2499 = vmatprep.subr.bf16.mxu0 %v3856_v50  ;;  %2581 = vmatprep.subr.bf16.mxu1 %v3859_v51  ;;  %v4292_v50 = vld [vmem:[%s4332_s2] sm:$0xf]  ;;  %v373_v51 = vsub.s32 1, %v4235_v46 }
 0x108   :  { %2500 = vmatpush1.bf16.msra.mxu0 %v3854_v52  ;;  %2582 = vmatpush1.bf16.msra.mxu1 %v3857_v54  ;;  %v381_v52 = vsub.s32 3, %v4235_v46  ;;  %v370_v54 = vrot.slane %v4292_v50, %v369_v49 }
 0x109   :  { %2501 = vmatprep.subr.bf16.mxu0 %v3862_v53  ;;  %2583 = vmatprep.subr.bf16.mxu1 %v3865_v55  ;;  %v374_v53 = vrot.slane %v4292_v50, %v373_v51 }
 0x10a   :  { %v382_v55 = vrot.slane %v4292_v50, %v381_v52 }
 0x10c   :  { %2502 = vmatpush1.bf16.msra.mxu0 %v3860_v56  ;;  %2584 = vmatpush1.bf16.msra.mxu1 %v3863_v57 }
 0x10d   :  { %2503 = vmatprep.subr.bf16.mxu0 %v3868_v58  ;;  %2585 = vmatprep.subr.bf16.mxu1 %v3871_v59 }
 0x110   :  { %2504 = vmatpush1.bf16.msra.mxu0 %v3866_v60  ;;  %2586 = vmatpush1.bf16.msra.mxu1 %v3869_v61 }
 0x111   :  { %2505 = vmatprep.subr.bf16.mxu0 %v3874_v62  ;;  %2587 = vmatprep.subr.bf16.mxu1 %v3877_v63 }
 0x114   :  { %2506 = vmatpush1.bf16.msra.mxu0 %v3872_v0  ;;  %2588 = vmatpush1.bf16.msra.mxu1 %v3875_v1 }
 0x115   :  { %2507 = vmatprep.subr.bf16.mxu0 %v3880_v2  ;;  %2589 = vmatprep.subr.bf16.mxu1 %v3883_v3 }
 0x118   :  { %2508 = vmatpush1.bf16.msra.mxu0 %v3878_v4  ;;  %2590 = vmatpush1.bf16.msra.mxu1 %v3881_v5 }
 0x119   :  { %2509 = vmatprep.subr.bf16.mxu0 %v3886_v6  ;;  %2591 = vmatprep.subr.bf16.mxu1 %v3889_v7  ;;  %v3944_v7 = vld [vmem:[#allocation4 + $0x200] ss:$16 sps:$4 sm:$0xff]  }
 0x11c   :  { %2510 = vmatpush1.bf16.msra.mxu0 %v3884_v8  ;;  %2592 = vmatpush1.bf16.msra.mxu1 %v3887_v9  ;;  %v3947_v8 = vld [vmem:[#allocation4 + $0x208] ss:$16 sps:$4 sm:$0xff]  }
 0x11d   :  { %2511 = vmatprep.subr.bf16.mxu0 %v3892_v10  ;;  %2593 = vmatprep.subr.bf16.mxu1 %v3895_v11  ;;  %v3952_v10 = vld [vmem:[#allocation4 + $0x224] ss:$16 sps:$4 sm:$0xff]   ;;  %v3955_v11 = vld [vmem:[#allocation4 + $0x22c] ss:$16 sps:$4 sm:$0xff]  }
 0x120   :  { %2512 = vmatpush1.bf16.msra.mxu0 %v3890_v14  ;;  %2594 = vmatpush1.bf16.msra.mxu1 %v3893_v15  ;;  %v3950_v15 = vld [vmem:[#allocation4 + $0x220] ss:$16 sps:$4 sm:$0xff]  }
 0x121   :  { %2513 = vmatprep.subr.bf16.mxu0 %v3898_v16  ;;  %2595 = vmatprep.subr.bf16.mxu1 %v3901_v17  ;;  %v3953_v16 = vld [vmem:[#allocation4 + $0x228] ss:$16 sps:$4 sm:$0xff]   ;;  %v3958_v17 = vld [vmem:[#allocation4 + $0x244] ss:$16 sps:$4 sm:$0xff]  }
 0x124   :  { %2514 = vmatpush1.bf16.msra.mxu0 %v3896_v18  ;;  %2596 = vmatpush1.bf16.msra.mxu1 %v3899_v19  ;;  %v3961_v18 = vld [vmem:[#allocation4 + $0x24c] ss:$16 sps:$4 sm:$0xff]   ;;  %v3956_v19 = vld [vmem:[#allocation4 + $0x240] ss:$16 sps:$4 sm:$0xff]  }
 0x125   :  { %2515 = vmatprep.subr.bf16.mxu0 %v3904_v20  ;;  %2597 = vmatprep.subr.bf16.mxu1 %v3907_v21  ;;  %v3959_v20 = vld [vmem:[#allocation4 + $0x248] ss:$16 sps:$4 sm:$0xff]   ;;  %v3964_v21 = vld [vmem:[#allocation4 + $0x264] ss:$16 sps:$4 sm:$0xff]  }
 0x128   :  { %2516 = vmatpush1.bf16.msra.mxu0 %v3902_v22  ;;  %2598 = vmatpush1.bf16.msra.mxu1 %v3905_v23  ;;  %v3967_v22 = vld [vmem:[#allocation4 + $0x26c] ss:$16 sps:$4 sm:$0xff]   ;;  %v3962_v23 = vld [vmem:[#allocation4 + $0x260] ss:$16 sps:$4 sm:$0xff]  }
 0x129   :  { %2517 = vmatprep.subr.bf16.mxu0 %v3910_v24  ;;  %2599 = vmatprep.subr.bf16.mxu1 %v3913_v25  ;;  %v3965_v24 = vld [vmem:[#allocation4 + $0x268] ss:$16 sps:$4 sm:$0xff]   ;;  %v3970_v25 = vld [vmem:[#allocation4 + $0x284] ss:$16 sps:$4 sm:$0xff]  }
 0x12c   :  { %2518 = vmatpush1.bf16.msra.mxu0 %v3908_v26  ;;  %2600 = vmatpush1.bf16.msra.mxu1 %v3911_v27  ;;  %v3973_v26 = vld [vmem:[#allocation4 + $0x28c] ss:$16 sps:$4 sm:$0xff]   ;;  %v3968_v27 = vld [vmem:[#allocation4 + $0x280] ss:$16 sps:$4 sm:$0xff]  }
 0x12d   :  { %2519 = vmatprep.subr.bf16.mxu0 %v3916_v28  ;;  %2601 = vmatprep.subr.bf16.mxu1 %v3919_v29  ;;  %v3971_v28 = vld [vmem:[#allocation4 + $0x288] ss:$16 sps:$4 sm:$0xff]   ;;  %v3976_v29 = vld [vmem:[#allocation4 + $0x2a4] ss:$16 sps:$4 sm:$0xff]  }
 0x130   :  { %2520 = vmatpush1.bf16.msra.mxu0 %v3914_v30  ;;  %2602 = vmatpush1.bf16.msra.mxu1 %v3917_v31  ;;  %v3979_v30 = vld [vmem:[#allocation4 + $0x2ac] ss:$16 sps:$4 sm:$0xff]   ;;  %v3974_v31 = vld [vmem:[#allocation4 + $0x2a0] ss:$16 sps:$4 sm:$0xff]  }
 0x131   :  { %2521 = vmatprep.subr.bf16.mxu0 %v3922_v32  ;;  %2603 = vmatprep.subr.bf16.mxu1 %v3925_v33  ;;  %v3977_v32 = vld [vmem:[#allocation4 + $0x2a8] ss:$16 sps:$4 sm:$0xff]   ;;  %v3982_v33 = vld [vmem:[#allocation4 + $0x2c4] ss:$16 sps:$4 sm:$0xff]  }
 0x134   :  { %2522 = vmatpush1.bf16.msra.mxu0 %v3920_v12  ;;  %2604 = vmatpush1.bf16.msra.mxu1 %v3923_v13  ;;  %v3985_v12 = vld [vmem:[#allocation4 + $0x2cc] ss:$16 sps:$4 sm:$0xff]   ;;  %v3980_v13 = vld [vmem:[#allocation4 + $0x2c0] ss:$16 sps:$4 sm:$0xff]  }
 0x135   :  { %2523 = vmatprep.subr.bf16.mxu0 %v3928_v34  ;;  %2605 = vmatprep.subr.bf16.mxu1 %v3931_v35  ;;  %v3983_v34 = vld [vmem:[#allocation4 + $0x2c8] ss:$16 sps:$4 sm:$0xff]   ;;  %v3988_v35 = vld [vmem:[#allocation4 + $0x2e4] ss:$16 sps:$4 sm:$0xff]  }
 0x138   :  { %2524 = vmatpush1.bf16.msra.mxu0 %v3926_v37  ;;  %2606 = vmatpush1.bf16.msra.mxu1 %v3929_v38  ;;  %v3991_v37 = vld [vmem:[#allocation4 + $0x2ec] ss:$16 sps:$4 sm:$0xff]   ;;  %v3986_v38 = vld [vmem:[#allocation4 + $0x2e0] ss:$16 sps:$4 sm:$0xff]  }
 0x139   :  { %2525 = vmatprep.subr.bf16.mxu0 %v3934_v40  ;;  %2607 = vmatprep.subr.bf16.mxu1 %v3937_v41  ;;  %v3989_v40 = vld [vmem:[#allocation4 + $0x2e8] ss:$16 sps:$4 sm:$0xff]   ;;  %v3994_v41 = vld [vmem:[#allocation4 + $0x304] ss:$16 sps:$4 sm:$0xff]  }
 0x13c   :  { %2526 = vmatpush1.bf16.msra.mxu0 %v3932_v36  ;;  %2608 = vmatpush1.bf16.msra.mxu1 %v3935_v39  ;;  %v3997_v36 = vld [vmem:[#allocation4 + $0x30c] ss:$16 sps:$4 sm:$0xff]   ;;  %v3992_v39 = vld [vmem:[#allocation4 + $0x300] ss:$16 sps:$4 sm:$0xff]  }
 0x13d   :  { %2527 = vmatprep.subr.bf16.mxu0 %v3940_v42  ;;  %2609 = vmatprep.subr.bf16.mxu1 %v3943_v43  ;;  %v3995_v42 = vld [vmem:[#allocation4 + $0x308] ss:$16 sps:$4 sm:$0xff]   ;;  %v4000_v43 = vld [vmem:[#allocation4 + $0x324] ss:$16 sps:$4 sm:$0xff]  }
 0x140   :  { %2528 = vmatpush1.bf16.msra.mxu0 %v3938_v44  ;;  %2610 = vmatpush1.bf16.msra.mxu1 %v3941_v45  ;;  %v4003_v44 = vld [vmem:[#allocation4 + $0x32c] ss:$16 sps:$4 sm:$0xff]   ;;  %v3998_v45 = vld [vmem:[#allocation4 + $0x320] ss:$16 sps:$4 sm:$0xff]  }
 0x141   :  { %2538 = vmatprep.subr.bf16.mxu0 %v3946_v47  ;;  %2620 = vmatprep.subr.bf16.mxu1 %v3949_v48  ;;  %v4001_v47 = vld [vmem:[#allocation4 + $0x328] ss:$16 sps:$4 sm:$0xff]   ;;  %v4006_v48 = vld [vmem:[#allocation4 + $0x344] ss:$16 sps:$4 sm:$0xff]  }
 0x1d6   :  { %v1528_v56 = vpop.f32.mrb[0].mxu0  ;;  %v4305_v57 = vpop.f32.mrb[0].mxu1 }
 0x1d7   :  { %v3492_v58 = vadd.f32 %v1528_v56, %v370_v54  ;;  %v1530_v59 = vpop.f32.mrb[1].mxu0  ;;  %v1694_v60 = vpop.f32.mrb[1].mxu1  ;;  %v4009_v54 = vld [vmem:[#allocation4 + $0x34c] ss:$16 sps:$4 sm:$0xff]   ;;  %v4012_v56 = vld [vmem:[#allocation4 + $0x364] ss:$16 sps:$4 sm:$0xff]  }
 0x1d8   :  { %v3493_v61 = vadd.f32 %v1530_v59, %v374_v53  ;;  %v3495_v62 = vadd.f32 %v1694_v60, %v382_v55  ;;  %v1532_v63 = vpop.f32.mrb[2].mxu0  ;;  %v1696_v0 = vpop.f32.mrb[2].mxu1  ;;  %v4004_v53 = vld [vmem:[#allocation4 + $0x340] ss:$16 sps:$4 sm:$0xff]   ;;  %v4007_v55 = vld [vmem:[#allocation4 + $0x348] ss:$16 sps:$4 sm:$0xff]  }
 0x1d9   :  { %v1699_v1 = vmax.f32 %v3492_v58, 0.0  ;;  %v1533_v2 = vpop.f32.mrb[3].mxu0  ;;  %v1697_v3 = vpop.f32.mrb[3].mxu1  ;;  %v4015_v58 = vld [vmem:[#allocation4 + $0x36c] ss:$16 sps:$4 sm:$0xff]  }
 0x1da   :  { %v1700_v4 = vmax.f32 %v3493_v61, 0.0  ;;  %v1702_v5 = vmax.f32 %v3495_v62, 0.0  ;;  %v4010_v59 = vld [vmem:[#allocation4 + $0x360] ss:$16 sps:$4 sm:$0xff]   ;;  %v4013_v60 = vld [vmem:[#allocation4 + $0x368] ss:$16 sps:$4 sm:$0xff]  }
 0x1db   :  { %v1703_v9 = vpack.c.bf16 %v1699_v1, %v1699_v1  ;;  %v4018_v61 = vld [vmem:[#allocation4 + $0x384] ss:$16 sps:$4 sm:$0xff]   ;;  %v4021_v62 = vld [vmem:[#allocation4 + $0x38c] ss:$16 sps:$4 sm:$0xff]   ;;  %v4016_v63 = vld [vmem:[#allocation4 + $0x380] ss:$16 sps:$4 sm:$0xff]  }
 0x1dc   :  { %v1704_v6 = vpack.c.bf16 %v1700_v4, %v1700_v4  ;;  %v1706_v14 = vpack.c.bf16 %v1702_v5, %v1702_v5  ;;  %v4019_v0 = vld [vmem:[#allocation4 + $0x388] ss:$16 sps:$4 sm:$0xff]   ;;  %v377_v1 = vsub.s32 2, %v4235_v46  ;;  %v4024_v2 = vld [vmem:[#allocation4 + $0x3a4] ss:$16 sps:$4 sm:$0xff]  }
 0x1dd   :  { %v4027_v3 = vld [vmem:[#allocation4 + $0x3ac] ss:$16 sps:$4 sm:$0xff]   ;;  %v4022_v4 = vld [vmem:[#allocation4 + $0x3a0] ss:$16 sps:$4 sm:$0xff]   ;;  %v4025_v5 = vld [vmem:[#allocation4 + $0x3a8] ss:$16 sps:$4 sm:$0xff]  }
 0x1de   :  { %2529 = vmatprep.mubr.bf16.mxu0 %v1704_v6  ;;  %2611 = vmatprep.mubr.bf16.mxu1 %v1704_v6  ;;  %v378_v6 = vrot.slane %v4292_v50, %v377_v1  ;;  %v4040_v50 = vld [vmem:[#allocation6 + $0x40] sm:$0xff]  }
 0x1df   :  { %2530 = vmatmul.mubr.bf16.vlgmr.msra.gmra.mrb[4].mxu0 %v1703_v9  ;;  %2612 = vmatmul.mubr.bf16.vlgmr.msra.gmra.mrb[4].mxu1 %v1703_v9  ;;  %v4028_v9 = vld [vmem:[#allocation4 + $0x3c0] ss:$16 sps:$4 sm:$0xff]  }
 0x1e0   :  { %2539 = vmatpush1.bf16.msra.mxu0 %v3944_v7  ;;  %2621 = vmatpush1.bf16.msra.mxu1 %v3947_v8  ;;  %v4030_v7 = vld [vmem:[#allocation4 + $0x3c4] ss:$16 sps:$4 sm:$0xff]   ;;  %v4033_v8 = vld [vmem:[#allocation4 + $0x3cc] ss:$16 sps:$4 sm:$0xff]  }
 0x1e1   :  { %2570 = vmatprep.mubr.bf16.mxu0 %v1706_v14  ;;  %2652 = vmatprep.mubr.bf16.mxu1 %v1706_v14  ;;  %v4036_v14 = vld [vmem:[#allocation4 + $0x3e4] ss:$16 sps:$4 sm:$0xff]  }
 0x1e2   :  { %2540 = vmatprep.subr.bf16.mxu0 %v3952_v10  ;;  %2622 = vmatprep.subr.bf16.mxu1 %v3955_v11  ;;  %v4031_v10 = vld [vmem:[#allocation4 + $0x3c8] ss:$16 sps:$4 sm:$0xff]   ;;  %v3494_v11 = vadd.f32 %v4305_v57, %v378_v6 }
 0x1e3   :  { %v4044_v57 = vld [vmem:[#allocation6 + $0x48] sm:$0xff]  }
 0x1e4   :  { %2541 = vmatpush1.bf16.msra.mxu0 %v3950_v15  ;;  %2623 = vmatpush1.bf16.msra.mxu1 %v3953_v16  ;;  %v4039_v15 = vld [vmem:[#allocation4 + $0x3ec] ss:$16 sps:$4 sm:$0xff]   ;;  %v4034_v16 = vld [vmem:[#allocation4 + $0x3e0] ss:$16 sps:$4 sm:$0xff]  }
 0x1e5   :  { %2542 = vmatprep.subr.bf16.mxu0 %v3958_v17  ;;  %2624 = vmatprep.subr.bf16.mxu1 %v3961_v18  ;;  %v4037_v17 = vld [vmem:[#allocation4 + $0x3e8] ss:$16 sps:$4 sm:$0xff]   ;;  %v1701_v18 = vmax.f32 %v3494_v11, 0.0 }
 0x1e8   :  { %2543 = vmatpush1.bf16.msra.mxu0 %v3956_v19  ;;  %2625 = vmatpush1.bf16.msra.mxu1 %v3959_v20  ;;  %v4041_v19 = vld [vmem:[#allocation6 + $0xc0] sm:$0xff]  }
 0x1e9   :  { %2544 = vmatprep.subr.bf16.mxu0 %v3964_v21  ;;  %2626 = vmatprep.subr.bf16.mxu1 %v3967_v22  ;;  %v4042_v20 = vld [vmem:[#allocation6] sm:$0xff]   ;;  %v1705_v22 = vpack.c.bf16 %v1701_v18, %v1701_v18 }
 0x1ea   :  { %v4043_v21 = vld [vmem:[#allocation6 + $0x80] sm:$0xff]  }
 0x1eb   :  { %v3413_v18 = vld [vmem:[%s4336_s6] ss:$0 sm:$0xff] }
 0x1ec   :  { %2545 = vmatpush1.bf16.msra.mxu0 %v3962_v23  ;;  %2627 = vmatpush1.bf16.msra.mxu1 %v3965_v24  ;;  %v4045_v23 = vld [vmem:[#allocation6 + $0xc8] sm:$0xff]  }
 0x1ed   :  { %2546 = vmatprep.subr.bf16.mxu0 %v3970_v25  ;;  %2628 = vmatprep.subr.bf16.mxu1 %v3973_v26  ;;  %v4046_v24 = vld [vmem:[#allocation6 + $0x8] sm:$0xff]   ;;  %v4048_v26 = vld [vmem:[#allocation6 + $0x50] sm:$0xff]  }
 0x1ee   :  { %v4047_v25 = vld [vmem:[#allocation6 + $0x88] sm:$0xff]  }
 0x1f0   :  { %2547 = vmatpush1.bf16.msra.mxu0 %v3968_v27  ;;  %2629 = vmatpush1.bf16.msra.mxu1 %v3971_v28  ;;  %v4049_v27 = vld [vmem:[#allocation6 + $0xd0] sm:$0xff]  }
 0x1f1   :  { %2548 = vmatprep.subr.bf16.mxu0 %v3976_v29  ;;  %2630 = vmatprep.subr.bf16.mxu1 %v3979_v30  ;;  %v4050_v28 = vld [vmem:[#allocation6 + $0x10] sm:$0xff]   ;;  %v4052_v30 = vld [vmem:[#allocation6 + $0x58] sm:$0xff]  }
 0x1f2   :  { %v4051_v29 = vld [vmem:[#allocation6 + $0x90] sm:$0xff]  }
 0x1f4   :  { %2549 = vmatpush1.bf16.msra.mxu0 %v3974_v31  ;;  %2631 = vmatpush1.bf16.msra.mxu1 %v3977_v32  ;;  %v4053_v31 = vld [vmem:[#allocation6 + $0xd8] sm:$0xff]  }
 0x1f5   :  { %2550 = vmatprep.subr.bf16.mxu0 %v3982_v33  ;;  %2632 = vmatprep.subr.bf16.mxu1 %v3985_v12  ;;  %v4054_v32 = vld [vmem:[#allocation6 + $0x18] sm:$0xff]   ;;  %v4056_v12 = vld [vmem:[#allocation6 + $0x60] sm:$0xff]  }
 0x1f6   :  { %v4055_v33 = vld [vmem:[#allocation6 + $0x98] sm:$0xff]  }
 0x1f8   :  { %2551 = vmatpush1.bf16.msra.mxu0 %v3980_v13  ;;  %2633 = vmatpush1.bf16.msra.mxu1 %v3983_v34  ;;  %v4057_v13 = vld [vmem:[#allocation6 + $0xe0] sm:$0xff]  }
 0x1f9   :  { %2552 = vmatprep.subr.bf16.mxu0 %v3988_v35  ;;  %2634 = vmatprep.subr.bf16.mxu1 %v3991_v37  ;;  %v4058_v34 = vld [vmem:[#allocation6 + $0x20] sm:$0xff]   ;;  %v4060_v37 = vld [vmem:[#allocation6 + $0x68] sm:$0xff]  }
 0x1fa   :  { %v4059_v35 = vld [vmem:[#allocation6 + $0xa0] sm:$0xff]  }
 0x1fc   :  { %2553 = vmatpush1.bf16.msra.mxu0 %v3986_v38  ;;  %2635 = vmatpush1.bf16.msra.mxu1 %v3989_v40  ;;  %v4061_v38 = vld [vmem:[#allocation6 + $0xe8] sm:$0xff]  }
 0x1fd   :  { %2554 = vmatprep.subr.bf16.mxu0 %v3994_v41  ;;  %2636 = vmatprep.subr.bf16.mxu1 %v3997_v36  ;;  %v4062_v40 = vld [vmem:[#allocation6 + $0x28] sm:$0xff]   ;;  %v4064_v36 = vld [vmem:[#allocation6 + $0x70] sm:$0xff]  }
 0x1fe   :  { %v4063_v41 = vld [vmem:[#allocation6 + $0xa8] sm:$0xff]  }
 0x200   :  { %2555 = vmatpush1.bf16.msra.mxu0 %v3992_v39  ;;  %2637 = vmatpush1.bf16.msra.mxu1 %v3995_v42  ;;  %v4065_v39 = vld [vmem:[#allocation6 + $0xf0] sm:$0xff]  }
 0x201   :  { %2556 = vmatprep.subr.bf16.mxu0 %v4000_v43  ;;  %2638 = vmatprep.subr.bf16.mxu1 %v4003_v44  ;;  %v4066_v42 = vld [vmem:[#allocation6 + $0x30] sm:$0xff]   ;;  %v4068_v44 = vld [vmem:[#allocation6 + $0x78] sm:$0xff]  }
 0x202   :  { %v4067_v43 = vld [vmem:[#allocation6 + $0xb0] sm:$0xff]  }
 0x204   :  { %2557 = vmatpush1.bf16.msra.mxu0 %v3998_v45  ;;  %2639 = vmatpush1.bf16.msra.mxu1 %v4001_v47  ;;  %v4069_v45 = vld [vmem:[#allocation6 + $0xf8] sm:$0xff]  }
 0x205   :  { %2558 = vmatprep.subr.bf16.mxu0 %v4006_v48  ;;  %2640 = vmatprep.subr.bf16.mxu1 %v4009_v54  ;;  %v4070_v47 = vld [vmem:[#allocation6 + $0x38] sm:$0xff]   ;;  %v1835_v54 = vld [vmem:[%s4334_s4] sm:$0xf] }
 0x206   :  { %v4071_v48 = vld [vmem:[#allocation6 + $0xb8] sm:$0xff]  }
 0x208   :  { %2559 = vmatpush1.bf16.msra.mxu0 %v4004_v53  ;;  %2641 = vmatpush1.bf16.msra.mxu1 %v4007_v55  ;;  %v1840_v53 = vrot.slane %v1835_v54, %v369_v49  ;;  %v1848_v55 = vrot.slane %v1835_v54, %v377_v1 }
 0x209   :  { %2560 = vmatprep.subr.bf16.mxu0 %v4012_v56  ;;  %2642 = vmatprep.subr.bf16.mxu1 %v4015_v58  ;;  %v1844_v56 = vrot.slane %v1835_v54, %v373_v51  ;;  %v1852_v58 = vrot.slane %v1835_v54, %v381_v52 }
 0x20c   :  { %2561 = vmatpush1.bf16.msra.mxu0 %v4010_v59  ;;  %2643 = vmatpush1.bf16.msra.mxu1 %v4013_v60 }
 0x20d   :  { %2562 = vmatprep.subr.bf16.mxu0 %v4018_v61  ;;  %2644 = vmatprep.subr.bf16.mxu1 %v4021_v62 }
 0x210   :  { %2563 = vmatpush1.bf16.msra.mxu0 %v4016_v63  ;;  %2645 = vmatpush1.bf16.msra.mxu1 %v4019_v0 }
 0x211   :  { %2564 = vmatprep.subr.bf16.mxu0 %v4024_v2  ;;  %2646 = vmatprep.subr.bf16.mxu1 %v4027_v3 }
 0x214   :  { %2565 = vmatpush1.bf16.msra.mxu0 %v4022_v4  ;;  %2647 = vmatpush1.bf16.msra.mxu1 %v4025_v5 }
 0x215   :  { %2566 = vmatprep.subr.bf16.mxu0 %v4030_v7  ;;  %2648 = vmatprep.subr.bf16.mxu1 %v4033_v8 }
 0x218   :  { %2567 = vmatpush1.bf16.msra.mxu0 %v4028_v9  ;;  %2649 = vmatpush1.bf16.msra.mxu1 %v4031_v10 }
 0x219   :  { %2568 = vmatprep.subr.bf16.mxu0 %v4036_v14  ;;  %2650 = vmatprep.subr.bf16.mxu1 %v4039_v15  ;;  %v4151_v14 = vmov 1966171168  }
 0x21a   :  { %v3015_v15 = vunpack.c.l.s4 %v4151_v14 }
 0x21c   :  { %2569 = vmatpush1.bf16.msra.mxu0 %v4034_v16  ;;  %2651 = vmatpush1.bf16.msra.mxu1 %v4037_v17 }
 0x21d   :  { %3448 = vmatprep.subr.bf16.mxu0 %v4040_v50  ;;  %3470 = vmatprep.subr.bf16.mxu1 %v4041_v19 }
 0x21f   :  { %2571 = vmatmul.mubr.bf16.vlgmr.msra.gmra.mrb[4].mxu0 %v1705_v22  ;;  %2653 = vmatmul.mubr.bf16.vlgmr.msra.gmra.mrb[4].mxu1 %v1705_v22  ;;  %v3016_v22 = vunpack.c.0.s8 %v3015_v15 }
 0x220   :  { %3449 = vmatpush3.bf16.msra.mxu0 %v4042_v20  ;;  %3471 = vmatpush3.bf16.msra.mxu1 %v4043_v21 }
 0x221   :  { %3450 = vmatprep.subr.bf16.mxu0 %v4044_v57  ;;  %3472 = vmatprep.subr.bf16.mxu1 %v4045_v23 }
 0x224   :  { %3451 = vmatpush3.bf16.msra.mxu0 %v4046_v24  ;;  %3473 = vmatpush3.bf16.msra.mxu1 %v4047_v25 }
 0x225   :  { %3452 = vmatprep.subr.bf16.mxu0 %v4048_v26  ;;  %3474 = vmatprep.subr.bf16.mxu1 %v4049_v27 }
 0x228   :  { %3453 = vmatpush3.bf16.msra.mxu0 %v4050_v28  ;;  %3475 = vmatpush3.bf16.msra.mxu1 %v4051_v29  ;;  %v3019_v28 = vsub.s32 %v3016_v22, %v4235_v46 }
 0x229   :  { %3454 = vmatprep.subr.bf16.mxu0 %v4052_v30  ;;  %3476 = vmatprep.subr.bf16.mxu1 %v4053_v31 }
 0x22c   :  { %3455 = vmatpush3.bf16.msra.mxu0 %v4054_v32  ;;  %3477 = vmatpush3.bf16.msra.mxu1 %v4055_v33 }
 0x22d   :  { %3456 = vmatprep.subr.bf16.mxu0 %v4056_v12  ;;  %3478 = vmatprep.subr.bf16.mxu1 %v4057_v13 }
 0x230   :  { %3457 = vmatpush3.bf16.msra.mxu0 %v4058_v34  ;;  %3479 = vmatpush3.bf16.msra.mxu1 %v4059_v35 }
 0x231   :  { %3458 = vmatprep.subr.bf16.mxu0 %v4060_v37  ;;  %3480 = vmatprep.subr.bf16.mxu1 %v4061_v38 }
 0x234   :  { %3459 = vmatpush3.bf16.msra.mxu0 %v4062_v40  ;;  %3481 = vmatpush3.bf16.msra.mxu1 %v4063_v41 }
 0x235   :  { %3460 = vmatprep.subr.bf16.mxu0 %v4064_v36  ;;  %3482 = vmatprep.subr.bf16.mxu1 %v4065_v39 }
 0x238   :  { %3461 = vmatpush3.bf16.msra.mxu0 %v4066_v42  ;;  %3483 = vmatpush3.bf16.msra.mxu1 %v4067_v43 }
 0x239   :  { %3462 = vmatprep.subr.bf16.mxu0 %v4068_v44  ;;  %3484 = vmatprep.subr.bf16.mxu1 %v4069_v45 }
 0x23c   :  { %3463 = vmatpush3.bf16.msra.mxu0 %v4070_v47  ;;  %3485 = vmatpush3.bf16.msra.mxu1 %v4071_v48 }
 0x2f2   :  { %v2572_v59 = vpop.f32.mrb[4].mxu0  ;;  %v2654_v60 = vpop.f32.mrb[4].mxu1 }
 0x2f3   :  { %v3496_v61 = vadd.f32 %v2572_v59, %v1840_v53  ;;  %v3498_v62 = vadd.f32 %v2654_v60, %v1848_v55  ;;  %v2574_v63 = vpop.f32.mrb[5].mxu0  ;;  %v2656_v0 = vpop.f32.mrb[5].mxu1 }
 0x2f4   :  { %v3497_v2 = vadd.f32 %v2574_v63, %v1844_v56  ;;  %v3499_v3 = vadd.f32 %v2656_v0, %v1852_v58  ;;  %v2576_v4 = vpop.f32.mrb[6].mxu0  ;;  %v2658_v5 = vpop.f32.mrb[6].mxu1 }
 0x2f5   :  { %v2661_v49 = vmax.f32 %v3496_v61, 0.0  ;;  %v2663_v6 = vmax.f32 %v3498_v62, 0.0  ;;  %v2577_v7 = vpop.f32.mrb[7].mxu0  ;;  %v2659_v1 = vpop.f32.mrb[7].mxu1 }
 0x2f6   :  { %v2662_v8 = vmax.f32 %v3497_v2, 0.0  ;;  %v2664_v9 = vmax.f32 %v3499_v3, 0.0 }
 0x2f7   :  { %v2665_v11 = vpack.c.bf16 %v2661_v49, %v2661_v49  ;;  %v2667_v52 = vpack.c.bf16 %v2663_v6, %v2663_v6 }
 0x2f8   :  { %v2666_v51 = vpack.c.bf16 %v2662_v8, %v2662_v8  ;;  %v2668_v10 = vpack.c.bf16 %v2664_v9, %v2664_v9 }
 0x2fa   :  { %2964 = vmatprep.mubr.bf16.mxu0 %v2666_v51  ;;  %3004 = vmatprep.mubr.bf16.mxu1 %v2668_v10 }
 0x2fb   :  { %2965 = vmatmul.mubr.bf16.vlgmr.msra.gmra.mrb[8].mxu0 %v2665_v11  ;;  %3005 = vmatmul.mubr.bf16.vlgmr.msra.gmra.mrb[8].mxu1 %v2667_v52 }
 0x3ce   :  { %v3464_v16 = vpop.f32.mrb[8].mxu0  ;;  %v3486_v17 = vpop.f32.mrb[8].mxu1 }
 0x3cf   :  { %v3465_v50 = vpop.f32.mrb[9].mxu0  ;;  %v3487_v19 = vpop.f32.mrb[9].mxu1 }
 0x3d0   :  { %v3466_v20 = vadd.f32 %v3465_v50, %v3464_v16  ;;  %v3488_v21 = vadd.f32 %v3487_v19, %v3486_v17  ;;  %v3467_v57 = vpop.f32.mrb[10].mxu0  ;;  %v3489_v23 = vpop.f32.mrb[10].mxu1 }
 0x3d1   :  { %v3468_v24 = vpop.f32.mrb[11].mxu0  ;;  %v3490_v25 = vpop.f32.mrb[11].mxu1 }
 0x3d2   :  { %v2967_v26 = vadd.f32 %v3466_v20, %v3413_v18 }
 0x3d4   :  { %v3007_v27 = vadd.f32 %v3488_v21, %v2967_v26 }
 0x3d6   :  { %v3012_v29 = vpack.c.bf16 %v3007_v27, %v3007_v27 }
 0x3d8   :  { %v3020_v30 = vrot.slane %v3012_v29, %v3019_v28 }
 0x3da   :  { %3446 = vst.sshfl [vmem:[#allocation7] sm:$0x1 pattern:$0x73625140] %v3020_v30 }
 0x3e1   :  { %v3063_v31 = vld [vmem:[#allocation7] sm:$0x1] }
 0x3e2   :  { %3064 = vst [vmem:[%s4337_s7] sm:$0x1] %v3063_v31 }
 0x3e3   :  { %3081 = vsyncpa [#allocation3], 1 }
 0x3e4   :  { %3082 = vsyncpa [#allocation5], 1 }

</bundles_post_ra>
